<compile_context>
chip_gen: v6e
topology: v6e:2x2x1
jax: 0.10.0
libtpu: 0.0.40
codegen_flags: <defaults>
</compile_context>

<pallas_src>
import functools
import math

import jax
import jax.numpy as jnp
from jax import lax
from jax.experimental import pallas as pl
from jax.experimental.pallas import tpu as pltpu


# ----------------------------------------------------------------------------
# Pallas kernel: one LSTM layer; one grid step = one chunk of timesteps.
# ----------------------------------------------------------------------------
def _lstm_layer_kernel(x_ref, h0_ref, c0_ref, wih_ref, whh_ref, b_ref,
                       out_ref, h_scr, c_scr, gx_scr, *, chunk, batch, hidden):
    Tc, B, H = chunk, batch, hidden
    ci = pl.program_id(0)

    # Initialize the recurrent carry from the learnable initial states.
    @pl.when(ci == 0)
    def _():
        h_scr[...] = h0_ref[...].astype(jnp.float32)
        c_scr[...] = c0_ref[...].astype(jnp.float32)

    # ---- Chunk prologue (no sequential dependency) -------------------------
    # One (Tc*B, I) @ (I, 4H) matmul fills MXU rows instead of Tc tiny pushes,
    # and folds the bias add off the serial path.
    gx = jnp.dot(x_ref[...], wih_ref[...],
                 preferred_element_type=jnp.float32) + b_ref[...]   # (Tc*B, 4H)
    # Split gates onto a leading axis ONCE so the serial loop never slices the
    # lane axis at non-128 offsets.
    for g in range(4):
        gx_scr[g] = gx[:, g * H:(g + 1) * H]

    whh = whh_ref[...].astype(jnp.float32)          # (4, H, H), per-gate W_hh^T
    w_i, w_f, w_g, w_o = whh[0], whh[1], whh[2], whh[3]

    # ---- Serial recurrence over the chunk -----------------------------------
    def step(t, carry):
        h, c = carry
        row = t * B
        g_i = gx_scr[0, pl.ds(row, B), :] + jnp.dot(
            h, w_i, preferred_element_type=jnp.float32)
        g_f = gx_scr[1, pl.ds(row, B), :] + jnp.dot(
            h, w_f, preferred_element_type=jnp.float32)
        g_g = gx_scr[2, pl.ds(row, B), :] + jnp.dot(
            h, w_g, preferred_element_type=jnp.float32)
        g_o = gx_scr[3, pl.ds(row, B), :] + jnp.dot(
            h, w_o, preferred_element_type=jnp.float32)

        i_t = jax.nn.sigmoid(g_i)
        f_t = jax.nn.sigmoid(g_f)
        c_new = f_t * c + i_t * jnp.tanh(g_g)
        h_new = jax.nn.sigmoid(g_o) * jnp.tanh(c_new)

        out_ref[pl.ds(row, B), :] = h_new.astype(out_ref.dtype)
        return (h_new, c_new)

    h_fin, c_fin = lax.fori_loop(0, Tc, step, (h_scr[...], c_scr[...]),
                                 unroll=Tc <= 16)
    h_scr[...] = h_fin
    c_scr[...] = c_fin


def _pick_chunk(T, max_chunk=128):
    if T <= max_chunk:
        return T
    for c in range(max_chunk, 0, -1):
        if T % c == 0:
            return c
    return 1


def _lstm_layer(x_flat, h0, c0, wih_t, whh_g, bias, *, seq_len, batch):
    """Run one LSTM layer over the whole sequence.

    x_flat : (T*B, I)   time-major, flattened input
    h0,c0  : (B, H)     initial states
    wih_t  : (I, 4H)    transposed PyTorch weight_ih
    whh_g  : (4, H, H)  per-gate transposed PyTorch weight_hh
    bias   : (1, 4H)    b_ih + b_hh
    returns (T*B, H)
    """
    T, B = seq_len, batch
    I = x_flat.shape[-1]
    H = h0.shape[-1]
    Tc = _pick_chunk(T)
    n_chunks = T // Tc

    kernel = functools.partial(_lstm_layer_kernel, chunk=Tc, batch=B, hidden=H)

    return pl.pallas_call(
        kernel,
        out_shape=jax.ShapeDtypeStruct((T * B, H), x_flat.dtype),
        grid_spec=pltpu.PrefetchScalarGridSpec(
            num_scalar_prefetch=0,
            grid=(n_chunks,),
            in_specs=[
                pl.BlockSpec((Tc * B, I), lambda c: (c, 0)),      # x chunk
                pl.BlockSpec((B, H), lambda c: (0, 0)),           # h0
                pl.BlockSpec((B, H), lambda c: (0, 0)),           # c0
                pl.BlockSpec((I, 4 * H), lambda c: (0, 0)),       # W_ih^T
                pl.BlockSpec((4, H, H), lambda c: (0, 0, 0)),     # W_hh^T / gate
                pl.BlockSpec((1, 4 * H), lambda c: (0, 0)),       # bias
            ],
            out_specs=pl.BlockSpec((Tc * B, H), lambda c: (c, 0)),
            scratch_shapes=[
                pltpu.VMEM((B, H), jnp.float32),            # h carry
                pltpu.VMEM((B, H), jnp.float32),            # c carry
                pltpu.VMEM((4, Tc * B, H), jnp.float32),    # precomputed x-gates
            ],
        ),
        compiler_params=pltpu.CompilerParams(
            dimension_semantics=("arbitrary",),   # sequential recurrence
            vmem_limit_bytes=32 * 1024 * 1024,
        ),
    )(x_flat, h0, c0, wih_t, whh_g, bias)


# ----------------------------------------------------------------------------
# Module-level wrapper (parameter init + layer stacking glue in plain JAX).
# ----------------------------------------------------------------------------
class ShouldModelPallas:
    def __init__(self, input_size, hidden_size, num_layers=1, dropout=0.0,
                 key=jax.random.PRNGKey(0)):
        self.input_size = input_size
        self.hidden_size = hidden_size
        self.num_layers = num_layers
        self.dropout = dropout
        # TODO(synk): inter-layer dropout not implemented (module default 0.0).

        # Learnable initial states, zeros as in __init__.
        self.hidden_state = jnp.zeros((num_layers, 1, hidden_size), jnp.float32)
        self.cell_state = jnp.zeros((num_layers, 1, hidden_size), jnp.float32)

        # nn.LSTM default init: U(-k, k), k = 1/sqrt(hidden_size).
        k = 1.0 / math.sqrt(hidden_size)
        H = hidden_size
        self.params = []         # raw PyTorch-layout params (for the reference)
        self.kernel_params = []  # precomputed kernel-friendly layouts
        for layer in range(num_layers):
            in_sz = input_size if layer == 0 else hidden_size
            key, k1, k2, k3, k4 = jax.random.split(key, 5)
            w_ih = jax.random.uniform(k1, (4 * H, in_sz), jnp.float32, -k, k)
            w_hh = jax.random.uniform(k2, (4 * H, H), jnp.float32, -k, k)
            b_ih = jax.random.uniform(k3, (4 * H,), jnp.float32, -k, k)
            b_hh = jax.random.uniform(k4, (4 * H,), jnp.float32, -k, k)
            self.params.append((w_ih, w_hh, b_ih, b_hh))
            # Precompute once (not per forward call):
            wih_t = jnp.transpose(w_ih)                             # (in_sz, 4H)
            whh_g = jnp.transpose(w_hh.reshape(4, H, H), (0, 2, 1))  # (4, H, H)
            bias = (b_ih + b_hh).reshape(1, 4 * H)                   # (1, 4H)
            self.kernel_params.append((wih_t, whh_g, bias))

    def __call__(self, x):
        # x: (B, T, input_size)  -- batch_first, like the PyTorch module.
        B, T, _ = x.shape
        H = self.hidden_size
        # time-major, flattened (T*B, feat) for lane-dense matmuls in-kernel.
        h_seq = jnp.transpose(x, (1, 0, 2)).reshape(T * B, -1)
        for layer in range(self.num_layers):
            wih_t, whh_g, bias = self.kernel_params[layer]
            h0 = jnp.broadcast_to(self.hidden_state[layer], (B, H))
            c0 = jnp.broadcast_to(self.cell_state[layer], (B, H))
            h_seq = _lstm_layer(h_seq, h0, c0, wih_t, whh_g, bias,
                                seq_len=T, batch=B)
            # TODO(synk): for num_layers>1 the intermediate sequence round-trips
            # through HBM between per-layer pallas_calls (full fusion left out).
        return jnp.transpose(h_seq.reshape(T, B, H), (1, 0, 2))  # (B, T, H)


# ----------------------------------------------------------------------------
# Pure-JAX reference (lax.scan) for correctness checking.
# ----------------------------------------------------------------------------
def _reference_forward(model, x):
    B, T, _ = x.shape
    H = model.hidden_size
    h_seq = jnp.transpose(x, (1, 0, 2))
    for layer in range(model.num_layers):
        w_ih, w_hh, b_ih, b_hh = model.params[layer]
        h0 = jnp.broadcast_to(model.hidden_state[layer], (B, H))
        c0 = jnp.broadcast_to(model.cell_state[layer], (B, H))

        def step(carry, x_t, w_ih=w_ih, w_hh=w_hh, b_ih=b_ih, b_hh=b_hh):
            h, c = carry
            g = x_t @ w_ih.T + h @ w_hh.T + b_ih + b_hh
            i = jax.nn.sigmoid(g[:, 0 * H:1 * H])
            f = jax.nn.sigmoid(g[:, 1 * H:2 * H])
            gg = jnp.tanh(g[:, 2 * H:3 * H])
            o = jax.nn.sigmoid(g[:, 3 * H:4 * H])
            c = f * c + i * gg
            h = o * jnp.tanh(c)
            return (h, c), h

        _, h_seq = jax.lax.scan(step, (h0, c0), h_seq)
    return jnp.transpose(h_seq, (1, 0, 2))


if __name__ == "__main__":
    # Batch must be 1 because the learnable initial states have a batch dim of 1
    # (nn.LSTM requires h0 batch == x batch).
    batch, seq, input_size, hidden_size, num_layers = 1, 8, 16, 32, 2

    model = ShouldModelPallas(input_size, hidden_size, num_layers=num_layers,
                              dropout=0.0, key=jax.random.PRNGKey(0))

    x = jax.random.normal(jax.random.PRNGKey(0), (batch, seq, input_size),
                          jnp.float32)

    out = model(x)
    out = jax.block_until_ready(out)

    ref = _reference_forward(model, x)
    assert out.shape == (batch, seq, hidden_size)
    assert jnp.allclose(out, ref, atol=1e-5, rtol=1e-5), "mismatch vs reference"

    print("KERNEL_OK")
</pallas_src>

<mosaic_0001>
module attributes {stable_mosaic.version = 11 : i64} {
  func.func @_lstm_layer_kernel(%arg0: i32, %arg1: memref<8x16xf32, #tpu.memory_space<vmem>>, %arg2: memref<1x32xf32, #tpu.memory_space<vmem>>, %arg3: memref<1x32xf32, #tpu.memory_space<vmem>>, %arg4: memref<16x128xf32, #tpu.memory_space<vmem>>, %arg5: memref<4x32x32xf32, #tpu.memory_space<vmem>>, %arg6: memref<1x128xf32, #tpu.memory_space<vmem>>, %arg7: memref<8x32xf32, #tpu.memory_space<vmem>>, %arg8: memref<1x32xf32, #tpu.memory_space<vmem>>, %arg9: memref<1x32xf32, #tpu.memory_space<vmem>>, %arg10: memref<4x8x32xf32, #tpu.memory_space<vmem>>) attributes {dimension_semantics = [#tpu.dimension_semantics<arbitrary>], iteration_bounds = array<i64: 1>, scalar_prefetch = 0 : i64, scratch_operands = 3 : i64, tpu.core_type = #tpu.core_type<tc>, window_params = [{transform_indices = @transform_0, window_bounds = array<i64: 8, 16>}, {pipeline_mode = #tpu.pipeline_mode<synchronous>, transform_indices = @transform_1, window_bounds = array<i64: 1, 32>}, {pipeline_mode = #tpu.pipeline_mode<synchronous>, transform_indices = @transform_2, window_bounds = array<i64: 1, 32>}, {pipeline_mode = #tpu.pipeline_mode<synchronous>, transform_indices = @transform_3, window_bounds = array<i64: 16, 128>}, {pipeline_mode = #tpu.pipeline_mode<synchronous>, transform_indices = @transform_4, window_bounds = array<i64: 4, 32, 32>}, {pipeline_mode = #tpu.pipeline_mode<synchronous>, transform_indices = @transform_5, window_bounds = array<i64: 1, 128>}, {transform_indices = @transform_6, window_bounds = array<i64: 8, 32>}]} {
    %c0_i32 = arith.constant 0 : i32
    %0 = arith.cmpi eq, %arg0, %c0_i32 : i32
    %1 = arith.extui %0 : i1 to i32
    %c0_i32_0 = arith.constant 0 : i32
    %2 = arith.cmpi ne, %1, %c0_i32_0 : i32
    scf.if %2 {
      %c0_163 = arith.constant 0 : index
      %c0_164 = arith.constant 0 : index
      %390 = vector.load %arg2[%c0_163, %c0_164] : memref<1x32xf32, #tpu.memory_space<vmem>>, vector<1x32xf32>
      %c0_165 = arith.constant 0 : index
      %c0_166 = arith.constant 0 : index
      %391 = vector.load %arg8[%c0_165, %c0_166] : memref<1x32xf32, #tpu.memory_space<vmem>>, vector<1x32xf32>
      tpu.vector_store %arg8[%c0_165, %c0_166], %390 {strides = array<i32>} : memref<1x32xf32, #tpu.memory_space<vmem>>, vector<1x32xf32>,
      %c0_167 = arith.constant 0 : index
      %c0_168 = arith.constant 0 : index
      %392 = vector.load %arg3[%c0_167, %c0_168] : memref<1x32xf32, #tpu.memory_space<vmem>>, vector<1x32xf32>
      %c0_169 = arith.constant 0 : index
      %c0_170 = arith.constant 0 : index
      %393 = vector.load %arg9[%c0_169, %c0_170] : memref<1x32xf32, #tpu.memory_space<vmem>>, vector<1x32xf32>
      tpu.vector_store %arg9[%c0_169, %c0_170], %392 {strides = array<i32>} : memref<1x32xf32, #tpu.memory_space<vmem>>, vector<1x32xf32>,
    } else {
    }
    %c0 = arith.constant 0 : index
    %c0_1 = arith.constant 0 : index
    %3 = vector.load %arg1[%c0, %c0_1] : memref<8x16xf32, #tpu.memory_space<vmem>>, vector<8x16xf32>
    %c0_2 = arith.constant 0 : index
    %c0_3 = arith.constant 0 : index
    %4 = vector.load %arg4[%c0_2, %c0_3] : memref<16x128xf32, #tpu.memory_space<vmem>>, vector<16x128xf32>
    %cst = arith.constant dense<0.000000e+00> : vector<8x128xf32>
    %5 = tpu.matmul %3, %4, %cst {dimension_numbers = #tpu.dot_dimension_numbers<[1], [0], [0], [1], [0, 0, 1, 1], [], []>} : vector<8x16xf32>, vector<16x128xf32>, vector<8x128xf32> -> vector<8x128xf32>
    %c0_4 = arith.constant 0 : index
    %c0_5 = arith.constant 0 : index
    %6 = vector.load %arg6[%c0_4, %c0_5] : memref<1x128xf32, #tpu.memory_space<vmem>>, vector<1x128xf32>
    %7 = vector.broadcast %6 : vector<1x128xf32> to vector<8x128xf32>
    %8 = arith.addf %5, %7 : vector<8x128xf32>
    %9 = vector.extract_strided_slice %8 {offsets = [0, 0], sizes = [8, 32], strides = [1, 1]} : vector<8x128xf32> to vector<8x32xf32>
    %c0_6 = arith.constant 0 : index
    %c0_7 = arith.constant 0 : index
    %c0_8 = arith.constant 0 : index
    %10 = vector.load %arg10[%c0_6, %c0_7, %c0_8] : memref<4x8x32xf32, #tpu.memory_space<vmem>>, vector<1x8x32xf32>
    %11 = vector.shape_cast %10 : vector<1x8x32xf32> to vector<8x32xf32>
    %12 = vector.shape_cast %9 : vector<8x32xf32> to vector<1x8x32xf32>
    tpu.vector_store %arg10[%c0_6, %c0_7, %c0_8], %12 {strides = array<i32>} : memref<4x8x32xf32, #tpu.memory_space<vmem>>, vector<1x8x32xf32>,
    %13 = vector.extract_strided_slice %8 {offsets = [0, 32], sizes = [8, 32], strides = [1, 1]} : vector<8x128xf32> to vector<8x32xf32>
    %c1 = arith.constant 1 : index
    %c0_9 = arith.constant 0 : index
    %c0_10 = arith.constant 0 : index
    %14 = vector.load %arg10[%c1, %c0_9, %c0_10] : memref<4x8x32xf32, #tpu.memory_space<vmem>>, vector<1x8x32xf32>
    %15 = vector.shape_cast %14 : vector<1x8x32xf32> to vector<8x32xf32>
    %16 = vector.shape_cast %13 : vector<8x32xf32> to vector<1x8x32xf32>
    tpu.vector_store %arg10[%c1, %c0_9, %c0_10], %16 {strides = array<i32>} : memref<4x8x32xf32, #tpu.memory_space<vmem>>, vector<1x8x32xf32>,
    %17 = vector.extract_strided_slice %8 {offsets = [0, 64], sizes = [8, 32], strides = [1, 1]} : vector<8x128xf32> to vector<8x32xf32>
    %c2 = arith.constant 2 : index
    %c0_11 = arith.constant 0 : index
    %c0_12 = arith.constant 0 : index
    %18 = vector.load %arg10[%c2, %c0_11, %c0_12] : memref<4x8x32xf32, #tpu.memory_space<vmem>>, vector<1x8x32xf32>
    %19 = vector.shape_cast %18 : vector<1x8x32xf32> to vector<8x32xf32>
    %20 = vector.shape_cast %17 : vector<8x32xf32> to vector<1x8x32xf32>
    tpu.vector_store %arg10[%c2, %c0_11, %c0_12], %20 {strides = array<i32>} : memref<4x8x32xf32, #tpu.memory_space<vmem>>, vector<1x8x32xf32>,
    %21 = vector.extract_strided_slice %8 {offsets = [0, 96], sizes = [8, 32], strides = [1, 1]} : vector<8x128xf32> to vector<8x32xf32>
    %c3 = arith.constant 3 : index
    %c0_13 = arith.constant 0 : index
    %c0_14 = arith.constant 0 : index
    %22 = vector.load %arg10[%c3, %c0_13, %c0_14] : memref<4x8x32xf32, #tpu.memory_space<vmem>>, vector<1x8x32xf32>
    %23 = vector.shape_cast %22 : vector<1x8x32xf32> to vector<8x32xf32>
    %24 = vector.shape_cast %21 : vector<8x32xf32> to vector<1x8x32xf32>
    tpu.vector_store %arg10[%c3, %c0_13, %c0_14], %24 {strides = array<i32>} : memref<4x8x32xf32, #tpu.memory_space<vmem>>, vector<1x8x32xf32>,
    %c0_15 = arith.constant 0 : index
    %c0_16 = arith.constant 0 : index
    %c0_17 = arith.constant 0 : index
    %25 = vector.load %arg5[%c0_15, %c0_16, %c0_17] : memref<4x32x32xf32, #tpu.memory_space<vmem>>, vector<4x32x32xf32>
    %26 = vector.extract_strided_slice %25 {offsets = [0, 0, 0], sizes = [1, 32, 32], strides = [1, 1, 1]} : vector<4x32x32xf32> to vector<1x32x32xf32>
    %27 = vector.shape_cast %26 : vector<1x32x32xf32> to vector<32x32xf32>
    %28 = vector.extract_strided_slice %25 {offsets = [1, 0, 0], sizes = [1, 32, 32], strides = [1, 1, 1]} : vector<4x32x32xf32> to vector<1x32x32xf32>
    %29 = vector.shape_cast %28 : vector<1x32x32xf32> to vector<32x32xf32>
    %30 = vector.extract_strided_slice %25 {offsets = [2, 0, 0], sizes = [1, 32, 32], strides = [1, 1, 1]} : vector<4x32x32xf32> to vector<1x32x32xf32>
    %31 = vector.shape_cast %30 : vector<1x32x32xf32> to vector<32x32xf32>
    %32 = vector.extract_strided_slice %25 {offsets = [3, 0, 0], sizes = [1, 32, 32], strides = [1, 1, 1]} : vector<4x32x32xf32> to vector<1x32x32xf32>
    %33 = vector.shape_cast %32 : vector<1x32x32xf32> to vector<32x32xf32>
    %c0_18 = arith.constant 0 : index
    %c0_19 = arith.constant 0 : index
    %34 = vector.load %arg8[%c0_18, %c0_19] : memref<1x32xf32, #tpu.memory_space<vmem>>, vector<1x32xf32>
    %c0_20 = arith.constant 0 : index
    %c0_21 = arith.constant 0 : index
    %35 = vector.load %arg9[%c0_20, %c0_21] : memref<1x32xf32, #tpu.memory_space<vmem>>, vector<1x32xf32>
    %c0_i32_22 = arith.constant 0 : i32
    %c1_i32 = arith.constant 1 : i32
    %36 = arith.muli %c0_i32_22, %c1_i32 : i32
    %c0_23 = arith.constant 0 : index
    %37 = arith.index_cast %36 : i32 to index
    %c0_24 = arith.constant 0 : index
    %38 = vector.load %arg10[%c0_23, %37, %c0_24] : memref<4x8x32xf32, #tpu.memory_space<vmem>>, vector<1x1x32xf32>
    %39 = vector.shape_cast %38 : vector<1x1x32xf32> to vector<1x32xf32>
    %cst_25 = arith.constant dense<0.000000e+00> : vector<1x32xf32>
    %40 = tpu.matmul %34, %27, %cst_25 {dimension_numbers = #tpu.dot_dimension_numbers<[1], [0], [0], [1], [0, 0, 1, 1], [], []>} : vector<1x32xf32>, vector<32x32xf32>, vector<1x32xf32> -> vector<1x32xf32>
    %41 = arith.addf %39, %40 : vector<1x32xf32>
    %c1_26 = arith.constant 1 : index
    %42 = arith.index_cast %36 : i32 to index
    %c0_27 = arith.constant 0 : index
    %43 = vector.load %arg10[%c1_26, %42, %c0_27] : memref<4x8x32xf32, #tpu.memory_space<vmem>>, vector<1x1x32xf32>
    %44 = vector.shape_cast %43 : vector<1x1x32xf32> to vector<1x32xf32>
    %cst_28 = arith.constant dense<0.000000e+00> : vector<1x32xf32>
    %45 = tpu.matmul %34, %29, %cst_28 {dimension_numbers = #tpu.dot_dimension_numbers<[1], [0], [0], [1], [0, 0, 1, 1], [], []>} : vector<1x32xf32>, vector<32x32xf32>, vector<1x32xf32> -> vector<1x32xf32>
    %46 = arith.addf %44, %45 : vector<1x32xf32>
    %c2_29 = arith.constant 2 : index
    %47 = arith.index_cast %36 : i32 to index
    %c0_30 = arith.constant 0 : index
    %48 = vector.load %arg10[%c2_29, %47, %c0_30] : memref<4x8x32xf32, #tpu.memory_space<vmem>>, vector<1x1x32xf32>
    %49 = vector.shape_cast %48 : vector<1x1x32xf32> to vector<1x32xf32>
    %cst_31 = arith.constant dense<0.000000e+00> : vector<1x32xf32>
    %50 = tpu.matmul %34, %31, %cst_31 {dimension_numbers = #tpu.dot_dimension_numbers<[1], [0], [0], [1], [0, 0, 1, 1], [], []>} : vector<1x32xf32>, vector<32x32xf32>, vector<1x32xf32> -> vector<1x32xf32>
    %51 = arith.addf %49, %50 : vector<1x32xf32>
    %c3_32 = arith.constant 3 : index
    %52 = arith.index_cast %36 : i32 to index
    %c0_33 = arith.constant 0 : index
    %53 = vector.load %arg10[%c3_32, %52, %c0_33] : memref<4x8x32xf32, #tpu.memory_space<vmem>>, vector<1x1x32xf32>
    %54 = vector.shape_cast %53 : vector<1x1x32xf32> to vector<1x32xf32>
    %cst_34 = arith.constant dense<0.000000e+00> : vector<1x32xf32>
    %55 = tpu.matmul %34, %33, %cst_34 {dimension_numbers = #tpu.dot_dimension_numbers<[1], [0], [0], [1], [0, 0, 1, 1], [], []>} : vector<1x32xf32>, vector<32x32xf32>, vector<1x32xf32> -> vector<1x32xf32>
    %56 = arith.addf %54, %55 : vector<1x32xf32>
    %57 = arith.negf %41 : vector<1x32xf32>
    %58 = math.exp %57 : vector<1x32xf32>
    %cst_35 = arith.constant 1.000000e+00 : f32
    %59 = vector.broadcast %cst_35 : f32 to vector<1x32xf32>
    %60 = arith.addf %59, %58 : vector<1x32xf32>
    %61 = arith.divf %59, %60 : vector<1x32xf32>
    %62 = arith.negf %46 : vector<1x32xf32>
    %63 = math.exp %62 : vector<1x32xf32>
    %cst_36 = arith.constant 1.000000e+00 : f32
    %64 = vector.broadcast %cst_36 : f32 to vector<1x32xf32>
    %65 = arith.addf %64, %63 : vector<1x32xf32>
    %66 = arith.divf %64, %65 : vector<1x32xf32>
    %67 = arith.mulf %66, %35 : vector<1x32xf32>
    %68 = math.tanh %51 : vector<1x32xf32>
    %69 = arith.mulf %61, %68 : vector<1x32xf32>
    %70 = arith.addf %67, %69 : vector<1x32xf32>
    %71 = arith.negf %56 : vector<1x32xf32>
    %72 = math.exp %71 : vector<1x32xf32>
    %cst_37 = arith.constant 1.000000e+00 : f32
    %73 = vector.broadcast %cst_37 : f32 to vector<1x32xf32>
    %74 = arith.addf %73, %72 : vector<1x32xf32>
    %75 = arith.divf %73, %74 : vector<1x32xf32>
    %76 = math.tanh %70 : vector<1x32xf32>
    %77 = arith.mulf %75, %76 : vector<1x32xf32>
    %78 = arith.index_cast %36 : i32 to index
    %c0_38 = arith.constant 0 : index
    %79 = vector.load %arg7[%78, %c0_38] : memref<8x32xf32, #tpu.memory_space<vmem>>, vector<1x32xf32>
    tpu.vector_store %arg7[%78, %c0_38], %77 {strides = array<i32>} : memref<8x32xf32, #tpu.memory_space<vmem>>, vector<1x32xf32>,
    %c1_i32_39 = arith.constant 1 : i32
    %c1_i32_40 = arith.constant 1 : i32
    %80 = arith.muli %c1_i32_39, %c1_i32_40 : i32
    %c0_41 = arith.constant 0 : index
    %81 = arith.index_cast %80 : i32 to index
    %c0_42 = arith.constant 0 : index
    %82 = vector.load %arg10[%c0_41, %81, %c0_42] : memref<4x8x32xf32, #tpu.memory_space<vmem>>, vector<1x1x32xf32>
    %83 = vector.shape_cast %82 : vector<1x1x32xf32> to vector<1x32xf32>
    %cst_43 = arith.constant dense<0.000000e+00> : vector<1x32xf32>
    %84 = tpu.matmul %77, %27, %cst_43 {dimension_numbers = #tpu.dot_dimension_numbers<[1], [0], [0], [1], [0, 0, 1, 1], [], []>} : vector<1x32xf32>, vector<32x32xf32>, vector<1x32xf32> -> vector<1x32xf32>
    %85 = arith.addf %83, %84 : vector<1x32xf32>
    %c1_44 = arith.constant 1 : index
    %86 = arith.index_cast %80 : i32 to index
    %c0_45 = arith.constant 0 : index
    %87 = vector.load %arg10[%c1_44, %86, %c0_45] : memref<4x8x32xf32, #tpu.memory_space<vmem>>, vector<1x1x32xf32>
    %88 = vector.shape_cast %87 : vector<1x1x32xf32> to vector<1x32xf32>
    %cst_46 = arith.constant dense<0.000000e+00> : vector<1x32xf32>
    %89 = tpu.matmul %77, %29, %cst_46 {dimension_numbers = #tpu.dot_dimension_numbers<[1], [0], [0], [1], [0, 0, 1, 1], [], []>} : vector<1x32xf32>, vector<32x32xf32>, vector<1x32xf32> -> vector<1x32xf32>
    %90 = arith.addf %88, %89 : vector<1x32xf32>
    %c2_47 = arith.constant 2 : index
    %91 = arith.index_cast %80 : i32 to index
    %c0_48 = arith.constant 0 : index
    %92 = vector.load %arg10[%c2_47, %91, %c0_48] : memref<4x8x32xf32, #tpu.memory_space<vmem>>, vector<1x1x32xf32>
    %93 = vector.shape_cast %92 : vector<1x1x32xf32> to vector<1x32xf32>
    %cst_49 = arith.constant dense<0.000000e+00> : vector<1x32xf32>
    %94 = tpu.matmul %77, %31, %cst_49 {dimension_numbers = #tpu.dot_dimension_numbers<[1], [0], [0], [1], [0, 0, 1, 1], [], []>} : vector<1x32xf32>, vector<32x32xf32>, vector<1x32xf32> -> vector<1x32xf32>
    %95 = arith.addf %93, %94 : vector<1x32xf32>
    %c3_50 = arith.constant 3 : index
    %96 = arith.index_cast %80 : i32 to index
    %c0_51 = arith.constant 0 : index
    %97 = vector.load %arg10[%c3_50, %96, %c0_51] : memref<4x8x32xf32, #tpu.memory_space<vmem>>, vector<1x1x32xf32>
    %98 = vector.shape_cast %97 : vector<1x1x32xf32> to vector<1x32xf32>
    %cst_52 = arith.constant dense<0.000000e+00> : vector<1x32xf32>
    %99 = tpu.matmul %77, %33, %cst_52 {dimension_numbers = #tpu.dot_dimension_numbers<[1], [0], [0], [1], [0, 0, 1, 1], [], []>} : vector<1x32xf32>, vector<32x32xf32>, vector<1x32xf32> -> vector<1x32xf32>
    %100 = arith.addf %98, %99 : vector<1x32xf32>
    %101 = arith.negf %85 : vector<1x32xf32>
    %102 = math.exp %101 : vector<1x32xf32>
    %cst_53 = arith.constant 1.000000e+00 : f32
    %103 = vector.broadcast %cst_53 : f32 to vector<1x32xf32>
    %104 = arith.addf %103, %102 : vector<1x32xf32>
    %105 = arith.divf %103, %104 : vector<1x32xf32>
    %106 = arith.negf %90 : vector<1x32xf32>
    %107 = math.exp %106 : vector<1x32xf32>
    %cst_54 = arith.constant 1.000000e+00 : f32
    %108 = vector.broadcast %cst_54 : f32 to vector<1x32xf32>
    %109 = arith.addf %108, %107 : vector<1x32xf32>
    %110 = arith.divf %108, %109 : vector<1x32xf32>
    %111 = arith.mulf %110, %70 : vector<1x32xf32>
    %112 = math.tanh %95 : vector<1x32xf32>
    %113 = arith.mulf %105, %112 : vector<1x32xf32>
    %114 = arith.addf %111, %113 : vector<1x32xf32>
    %115 = arith.negf %100 : vector<1x32xf32>
    %116 = math.exp %115 : vector<1x32xf32>
    %cst_55 = arith.constant 1.000000e+00 : f32
    %117 = vector.broadcast %cst_55 : f32 to vector<1x32xf32>
    %118 = arith.addf %117, %116 : vector<1x32xf32>
    %119 = arith.divf %117, %118 : vector<1x32xf32>
    %120 = math.tanh %114 : vector<1x32xf32>
    %121 = arith.mulf %119, %120 : vector<1x32xf32>
    %122 = arith.index_cast %80 : i32 to index
    %c0_56 = arith.constant 0 : index
    %123 = vector.load %arg7[%122, %c0_56] : memref<8x32xf32, #tpu.memory_space<vmem>>, vector<1x32xf32>
    tpu.vector_store %arg7[%122, %c0_56], %121 {strides = array<i32>} : memref<8x32xf32, #tpu.memory_space<vmem>>, vector<1x32xf32>,
    %c2_i32 = arith.constant 2 : i32
    %c1_i32_57 = arith.constant 1 : i32
    %124 = arith.muli %c2_i32, %c1_i32_57 : i32
    %c0_58 = arith.constant 0 : index
    %125 = arith.index_cast %124 : i32 to index
    %c0_59 = arith.constant 0 : index
    %126 = vector.load %arg10[%c0_58, %125, %c0_59] : memref<4x8x32xf32, #tpu.memory_space<vmem>>, vector<1x1x32xf32>
    %127 = vector.shape_cast %126 : vector<1x1x32xf32> to vector<1x32xf32>
    %cst_60 = arith.constant dense<0.000000e+00> : vector<1x32xf32>
    %128 = tpu.matmul %121, %27, %cst_60 {dimension_numbers = #tpu.dot_dimension_numbers<[1], [0], [0], [1], [0, 0, 1, 1], [], []>} : vector<1x32xf32>, vector<32x32xf32>, vector<1x32xf32> -> vector<1x32xf32>
    %129 = arith.addf %127, %128 : vector<1x32xf32>
    %c1_61 = arith.constant 1 : index
    %130 = arith.index_cast %124 : i32 to index
    %c0_62 = arith.constant 0 : index
    %131 = vector.load %arg10[%c1_61, %130, %c0_62] : memref<4x8x32xf32, #tpu.memory_space<vmem>>, vector<1x1x32xf32>
    %132 = vector.shape_cast %131 : vector<1x1x32xf32> to vector<1x32xf32>
    %cst_63 = arith.constant dense<0.000000e+00> : vector<1x32xf32>
    %133 = tpu.matmul %121, %29, %cst_63 {dimension_numbers = #tpu.dot_dimension_numbers<[1], [0], [0], [1], [0, 0, 1, 1], [], []>} : vector<1x32xf32>, vector<32x32xf32>, vector<1x32xf32> -> vector<1x32xf32>
    %134 = arith.addf %132, %133 : vector<1x32xf32>
    %c2_64 = arith.constant 2 : index
    %135 = arith.index_cast %124 : i32 to index
    %c0_65 = arith.constant 0 : index
    %136 = vector.load %arg10[%c2_64, %135, %c0_65] : memref<4x8x32xf32, #tpu.memory_space<vmem>>, vector<1x1x32xf32>
    %137 = vector.shape_cast %136 : vector<1x1x32xf32> to vector<1x32xf32>
    %cst_66 = arith.constant dense<0.000000e+00> : vector<1x32xf32>
    %138 = tpu.matmul %121, %31, %cst_66 {dimension_numbers = #tpu.dot_dimension_numbers<[1], [0], [0], [1], [0, 0, 1, 1], [], []>} : vector<1x32xf32>, vector<32x32xf32>, vector<1x32xf32> -> vector<1x32xf32>
    %139 = arith.addf %137, %138 : vector<1x32xf32>
    %c3_67 = arith.constant 3 : index
    %140 = arith.index_cast %124 : i32 to index
    %c0_68 = arith.constant 0 : index
    %141 = vector.load %arg10[%c3_67, %140, %c0_68] : memref<4x8x32xf32, #tpu.memory_space<vmem>>, vector<1x1x32xf32>
    %142 = vector.shape_cast %141 : vector<1x1x32xf32> to vector<1x32xf32>
    %cst_69 = arith.constant dense<0.000000e+00> : vector<1x32xf32>
    %143 = tpu.matmul %121, %33, %cst_69 {dimension_numbers = #tpu.dot_dimension_numbers<[1], [0], [0], [1], [0, 0, 1, 1], [], []>} : vector<1x32xf32>, vector<32x32xf32>, vector<1x32xf32> -> vector<1x32xf32>
    %144 = arith.addf %142, %143 : vector<1x32xf32>
    %145 = arith.negf %129 : vector<1x32xf32>
    %146 = math.exp %145 : vector<1x32xf32>
    %cst_70 = arith.constant 1.000000e+00 : f32
    %147 = vector.broadcast %cst_70 : f32 to vector<1x32xf32>
    %148 = arith.addf %147, %146 : vector<1x32xf32>
    %149 = arith.divf %147, %148 : vector<1x32xf32>
    %150 = arith.negf %134 : vector<1x32xf32>
    %151 = math.exp %150 : vector<1x32xf32>
    %cst_71 = arith.constant 1.000000e+00 : f32
    %152 = vector.broadcast %cst_71 : f32 to vector<1x32xf32>
    %153 = arith.addf %152, %151 : vector<1x32xf32>
    %154 = arith.divf %152, %153 : vector<1x32xf32>
    %155 = arith.mulf %154, %114 : vector<1x32xf32>
    %156 = math.tanh %139 : vector<1x32xf32>
    %157 = arith.mulf %149, %156 : vector<1x32xf32>
    %158 = arith.addf %155, %157 : vector<1x32xf32>
    %159 = arith.negf %144 : vector<1x32xf32>
    %160 = math.exp %159 : vector<1x32xf32>
    %cst_72 = arith.constant 1.000000e+00 : f32
    %161 = vector.broadcast %cst_72 : f32 to vector<1x32xf32>
    %162 = arith.addf %161, %160 : vector<1x32xf32>
    %163 = arith.divf %161, %162 : vector<1x32xf32>
    %164 = math.tanh %158 : vector<1x32xf32>
    %165 = arith.mulf %163, %164 : vector<1x32xf32>
    %166 = arith.index_cast %124 : i32 to index
    %c0_73 = arith.constant 0 : index
    %167 = vector.load %arg7[%166, %c0_73] : memref<8x32xf32, #tpu.memory_space<vmem>>, vector<1x32xf32>
    tpu.vector_store %arg7[%166, %c0_73], %165 {strides = array<i32>} : memref<8x32xf32, #tpu.memory_space<vmem>>, vector<1x32xf32>,
    %c3_i32 = arith.constant 3 : i32
    %c1_i32_74 = arith.constant 1 : i32
    %168 = arith.muli %c3_i32, %c1_i32_74 : i32
    %c0_75 = arith.constant 0 : index
    %169 = arith.index_cast %168 : i32 to index
    %c0_76 = arith.constant 0 : index
    %170 = vector.load %arg10[%c0_75, %169, %c0_76] : memref<4x8x32xf32, #tpu.memory_space<vmem>>, vector<1x1x32xf32>
    %171 = vector.shape_cast %170 : vector<1x1x32xf32> to vector<1x32xf32>
    %cst_77 = arith.constant dense<0.000000e+00> : vector<1x32xf32>
    %172 = tpu.matmul %165, %27, %cst_77 {dimension_numbers = #tpu.dot_dimension_numbers<[1], [0], [0], [1], [0, 0, 1, 1], [], []>} : vector<1x32xf32>, vector<32x32xf32>, vector<1x32xf32> -> vector<1x32xf32>
    %173 = arith.addf %171, %172 : vector<1x32xf32>
    %c1_78 = arith.constant 1 : index
    %174 = arith.index_cast %168 : i32 to index
    %c0_79 = arith.constant 0 : index
    %175 = vector.load %arg10[%c1_78, %174, %c0_79] : memref<4x8x32xf32, #tpu.memory_space<vmem>>, vector<1x1x32xf32>
    %176 = vector.shape_cast %175 : vector<1x1x32xf32> to vector<1x32xf32>
    %cst_80 = arith.constant dense<0.000000e+00> : vector<1x32xf32>
    %177 = tpu.matmul %165, %29, %cst_80 {dimension_numbers = #tpu.dot_dimension_numbers<[1], [0], [0], [1], [0, 0, 1, 1], [], []>} : vector<1x32xf32>, vector<32x32xf32>, vector<1x32xf32> -> vector<1x32xf32>
    %178 = arith.addf %176, %177 : vector<1x32xf32>
    %c2_81 = arith.constant 2 : index
    %179 = arith.index_cast %168 : i32 to index
    %c0_82 = arith.constant 0 : index
    %180 = vector.load %arg10[%c2_81, %179, %c0_82] : memref<4x8x32xf32, #tpu.memory_space<vmem>>, vector<1x1x32xf32>
    %181 = vector.shape_cast %180 : vector<1x1x32xf32> to vector<1x32xf32>
    %cst_83 = arith.constant dense<0.000000e+00> : vector<1x32xf32>
    %182 = tpu.matmul %165, %31, %cst_83 {dimension_numbers = #tpu.dot_dimension_numbers<[1], [0], [0], [1], [0, 0, 1, 1], [], []>} : vector<1x32xf32>, vector<32x32xf32>, vector<1x32xf32> -> vector<1x32xf32>
    %183 = arith.addf %181, %182 : vector<1x32xf32>
    %c3_84 = arith.constant 3 : index
    %184 = arith.index_cast %168 : i32 to index
    %c0_85 = arith.constant 0 : index
    %185 = vector.load %arg10[%c3_84, %184, %c0_85] : memref<4x8x32xf32, #tpu.memory_space<vmem>>, vector<1x1x32xf32>
    %186 = vector.shape_cast %185 : vector<1x1x32xf32> to vector<1x32xf32>
    %cst_86 = arith.constant dense<0.000000e+00> : vector<1x32xf32>
    %187 = tpu.matmul %165, %33, %cst_86 {dimension_numbers = #tpu.dot_dimension_numbers<[1], [0], [0], [1], [0, 0, 1, 1], [], []>} : vector<1x32xf32>, vector<32x32xf32>, vector<1x32xf32> -> vector<1x32xf32>
    %188 = arith.addf %186, %187 : vector<1x32xf32>
    %189 = arith.negf %173 : vector<1x32xf32>
    %190 = math.exp %189 : vector<1x32xf32>
    %cst_87 = arith.constant 1.000000e+00 : f32
    %191 = vector.broadcast %cst_87 : f32 to vector<1x32xf32>
    %192 = arith.addf %191, %190 : vector<1x32xf32>
    %193 = arith.divf %191, %192 : vector<1x32xf32>
    %194 = arith.negf %178 : vector<1x32xf32>
    %195 = math.exp %194 : vector<1x32xf32>
    %cst_88 = arith.constant 1.000000e+00 : f32
    %196 = vector.broadcast %cst_88 : f32 to vector<1x32xf32>
    %197 = arith.addf %196, %195 : vector<1x32xf32>
    %198 = arith.divf %196, %197 : vector<1x32xf32>
    %199 = arith.mulf %198, %158 : vector<1x32xf32>
    %200 = math.tanh %183 : vector<1x32xf32>
    %201 = arith.mulf %193, %200 : vector<1x32xf32>
    %202 = arith.addf %199, %201 : vector<1x32xf32>
    %203 = arith.negf %188 : vector<1x32xf32>
    %204 = math.exp %203 : vector<1x32xf32>
    %cst_89 = arith.constant 1.000000e+00 : f32
    %205 = vector.broadcast %cst_89 : f32 to vector<1x32xf32>
    %206 = arith.addf %205, %204 : vector<1x32xf32>
    %207 = arith.divf %205, %206 : vector<1x32xf32>
    %208 = math.tanh %202 : vector<1x32xf32>
    %209 = arith.mulf %207, %208 : vector<1x32xf32>
    %210 = arith.index_cast %168 : i32 to index
    %c0_90 = arith.constant 0 : index
    %211 = vector.load %arg7[%210, %c0_90] : memref<8x32xf32, #tpu.memory_space<vmem>>, vector<1x32xf32>
    tpu.vector_store %arg7[%210, %c0_90], %209 {strides = array<i32>} : memref<8x32xf32, #tpu.memory_space<vmem>>, vector<1x32xf32>,
    %c4_i32 = arith.constant 4 : i32
    %c1_i32_91 = arith.constant 1 : i32
    %212 = arith.muli %c4_i32, %c1_i32_91 : i32
    %c0_92 = arith.constant 0 : index
    %213 = arith.index_cast %212 : i32 to index
    %c0_93 = arith.constant 0 : index
    %214 = vector.load %arg10[%c0_92, %213, %c0_93] : memref<4x8x32xf32, #tpu.memory_space<vmem>>, vector<1x1x32xf32>
    %215 = vector.shape_cast %214 : vector<1x1x32xf32> to vector<1x32xf32>
    %cst_94 = arith.constant dense<0.000000e+00> : vector<1x32xf32>
    %216 = tpu.matmul %209, %27, %cst_94 {dimension_numbers = #tpu.dot_dimension_numbers<[1], [0], [0], [1], [0, 0, 1, 1], [], []>} : vector<1x32xf32>, vector<32x32xf32>, vector<1x32xf32> -> vector<1x32xf32>
    %217 = arith.addf %215, %216 : vector<1x32xf32>
    %c1_95 = arith.constant 1 : index
    %218 = arith.index_cast %212 : i32 to index
    %c0_96 = arith.constant 0 : index
    %219 = vector.load %arg10[%c1_95, %218, %c0_96] : memref<4x8x32xf32, #tpu.memory_space<vmem>>, vector<1x1x32xf32>
    %220 = vector.shape_cast %219 : vector<1x1x32xf32> to vector<1x32xf32>
    %cst_97 = arith.constant dense<0.000000e+00> : vector<1x32xf32>
    %221 = tpu.matmul %209, %29, %cst_97 {dimension_numbers = #tpu.dot_dimension_numbers<[1], [0], [0], [1], [0, 0, 1, 1], [], []>} : vector<1x32xf32>, vector<32x32xf32>, vector<1x32xf32> -> vector<1x32xf32>
    %222 = arith.addf %220, %221 : vector<1x32xf32>
    %c2_98 = arith.constant 2 : index
    %223 = arith.index_cast %212 : i32 to index
    %c0_99 = arith.constant 0 : index
    %224 = vector.load %arg10[%c2_98, %223, %c0_99] : memref<4x8x32xf32, #tpu.memory_space<vmem>>, vector<1x1x32xf32>
    %225 = vector.shape_cast %224 : vector<1x1x32xf32> to vector<1x32xf32>
    %cst_100 = arith.constant dense<0.000000e+00> : vector<1x32xf32>
    %226 = tpu.matmul %209, %31, %cst_100 {dimension_numbers = #tpu.dot_dimension_numbers<[1], [0], [0], [1], [0, 0, 1, 1], [], []>} : vector<1x32xf32>, vector<32x32xf32>, vector<1x32xf32> -> vector<1x32xf32>
    %227 = arith.addf %225, %226 : vector<1x32xf32>
    %c3_101 = arith.constant 3 : index
    %228 = arith.index_cast %212 : i32 to index
    %c0_102 = arith.constant 0 : index
    %229 = vector.load %arg10[%c3_101, %228, %c0_102] : memref<4x8x32xf32, #tpu.memory_space<vmem>>, vector<1x1x32xf32>
    %230 = vector.shape_cast %229 : vector<1x1x32xf32> to vector<1x32xf32>
    %cst_103 = arith.constant dense<0.000000e+00> : vector<1x32xf32>
    %231 = tpu.matmul %209, %33, %cst_103 {dimension_numbers = #tpu.dot_dimension_numbers<[1], [0], [0], [1], [0, 0, 1, 1], [], []>} : vector<1x32xf32>, vector<32x32xf32>, vector<1x32xf32> -> vector<1x32xf32>
    %232 = arith.addf %230, %231 : vector<1x32xf32>
    %233 = arith.negf %217 : vector<1x32xf32>
    %234 = math.exp %233 : vector<1x32xf32>
    %cst_104 = arith.constant 1.000000e+00 : f32
    %235 = vector.broadcast %cst_104 : f32 to vector<1x32xf32>
    %236 = arith.addf %235, %234 : vector<1x32xf32>
    %237 = arith.divf %235, %236 : vector<1x32xf32>
    %238 = arith.negf %222 : vector<1x32xf32>
    %239 = math.exp %238 : vector<1x32xf32>
    %cst_105 = arith.constant 1.000000e+00 : f32
    %240 = vector.broadcast %cst_105 : f32 to vector<1x32xf32>
    %241 = arith.addf %240, %239 : vector<1x32xf32>
    %242 = arith.divf %240, %241 : vector<1x32xf32>
    %243 = arith.mulf %242, %202 : vector<1x32xf32>
    %244 = math.tanh %227 : vector<1x32xf32>
    %245 = arith.mulf %237, %244 : vector<1x32xf32>
    %246 = arith.addf %243, %245 : vector<1x32xf32>
    %247 = arith.negf %232 : vector<1x32xf32>
    %248 = math.exp %247 : vector<1x32xf32>
    %cst_106 = arith.constant 1.000000e+00 : f32
    %249 = vector.broadcast %cst_106 : f32 to vector<1x32xf32>
    %250 = arith.addf %249, %248 : vector<1x32xf32>
    %251 = arith.divf %249, %250 : vector<1x32xf32>
    %252 = math.tanh %246 : vector<1x32xf32>
    %253 = arith.mulf %251, %252 : vector<1x32xf32>
    %254 = arith.index_cast %212 : i32 to index
    %c0_107 = arith.constant 0 : index
    %255 = vector.load %arg7[%254, %c0_107] : memref<8x32xf32, #tpu.memory_space<vmem>>, vector<1x32xf32>
    tpu.vector_store %arg7[%254, %c0_107], %253 {strides = array<i32>} : memref<8x32xf32, #tpu.memory_space<vmem>>, vector<1x32xf32>,
    %c5_i32 = arith.constant 5 : i32
    %c1_i32_108 = arith.constant 1 : i32
    %256 = arith.muli %c5_i32, %c1_i32_108 : i32
    %c0_109 = arith.constant 0 : index
    %257 = arith.index_cast %256 : i32 to index
    %c0_110 = arith.constant 0 : index
    %258 = vector.load %arg10[%c0_109, %257, %c0_110] : memref<4x8x32xf32, #tpu.memory_space<vmem>>, vector<1x1x32xf32>
    %259 = vector.shape_cast %258 : vector<1x1x32xf32> to vector<1x32xf32>
    %cst_111 = arith.constant dense<0.000000e+00> : vector<1x32xf32>
    %260 = tpu.matmul %253, %27, %cst_111 {dimension_numbers = #tpu.dot_dimension_numbers<[1], [0], [0], [1], [0, 0, 1, 1], [], []>} : vector<1x32xf32>, vector<32x32xf32>, vector<1x32xf32> -> vector<1x32xf32>
    %261 = arith.addf %259, %260 : vector<1x32xf32>
    %c1_112 = arith.constant 1 : index
    %262 = arith.index_cast %256 : i32 to index
    %c0_113 = arith.constant 0 : index
    %263 = vector.load %arg10[%c1_112, %262, %c0_113] : memref<4x8x32xf32, #tpu.memory_space<vmem>>, vector<1x1x32xf32>
    %264 = vector.shape_cast %263 : vector<1x1x32xf32> to vector<1x32xf32>
    %cst_114 = arith.constant dense<0.000000e+00> : vector<1x32xf32>
    %265 = tpu.matmul %253, %29, %cst_114 {dimension_numbers = #tpu.dot_dimension_numbers<[1], [0], [0], [1], [0, 0, 1, 1], [], []>} : vector<1x32xf32>, vector<32x32xf32>, vector<1x32xf32> -> vector<1x32xf32>
    %266 = arith.addf %264, %265 : vector<1x32xf32>
    %c2_115 = arith.constant 2 : index
    %267 = arith.index_cast %256 : i32 to index
    %c0_116 = arith.constant 0 : index
    %268 = vector.load %arg10[%c2_115, %267, %c0_116] : memref<4x8x32xf32, #tpu.memory_space<vmem>>, vector<1x1x32xf32>
    %269 = vector.shape_cast %268 : vector<1x1x32xf32> to vector<1x32xf32>
    %cst_117 = arith.constant dense<0.000000e+00> : vector<1x32xf32>
    %270 = tpu.matmul %253, %31, %cst_117 {dimension_numbers = #tpu.dot_dimension_numbers<[1], [0], [0], [1], [0, 0, 1, 1], [], []>} : vector<1x32xf32>, vector<32x32xf32>, vector<1x32xf32> -> vector<1x32xf32>
    %271 = arith.addf %269, %270 : vector<1x32xf32>
    %c3_118 = arith.constant 3 : index
    %272 = arith.index_cast %256 : i32 to index
    %c0_119 = arith.constant 0 : index
    %273 = vector.load %arg10[%c3_118, %272, %c0_119] : memref<4x8x32xf32, #tpu.memory_space<vmem>>, vector<1x1x32xf32>
    %274 = vector.shape_cast %273 : vector<1x1x32xf32> to vector<1x32xf32>
    %cst_120 = arith.constant dense<0.000000e+00> : vector<1x32xf32>
    %275 = tpu.matmul %253, %33, %cst_120 {dimension_numbers = #tpu.dot_dimension_numbers<[1], [0], [0], [1], [0, 0, 1, 1], [], []>} : vector<1x32xf32>, vector<32x32xf32>, vector<1x32xf32> -> vector<1x32xf32>
    %276 = arith.addf %274, %275 : vector<1x32xf32>
    %277 = arith.negf %261 : vector<1x32xf32>
    %278 = math.exp %277 : vector<1x32xf32>
    %cst_121 = arith.constant 1.000000e+00 : f32
    %279 = vector.broadcast %cst_121 : f32 to vector<1x32xf32>
    %280 = arith.addf %279, %278 : vector<1x32xf32>
    %281 = arith.divf %279, %280 : vector<1x32xf32>
    %282 = arith.negf %266 : vector<1x32xf32>
    %283 = math.exp %282 : vector<1x32xf32>
    %cst_122 = arith.constant 1.000000e+00 : f32
    %284 = vector.broadcast %cst_122 : f32 to vector<1x32xf32>
    %285 = arith.addf %284, %283 : vector<1x32xf32>
    %286 = arith.divf %284, %285 : vector<1x32xf32>
    %287 = arith.mulf %286, %246 : vector<1x32xf32>
    %288 = math.tanh %271 : vector<1x32xf32>
    %289 = arith.mulf %281, %288 : vector<1x32xf32>
    %290 = arith.addf %287, %289 : vector<1x32xf32>
    %291 = arith.negf %276 : vector<1x32xf32>
    %292 = math.exp %291 : vector<1x32xf32>
    %cst_123 = arith.constant 1.000000e+00 : f32
    %293 = vector.broadcast %cst_123 : f32 to vector<1x32xf32>
    %294 = arith.addf %293, %292 : vector<1x32xf32>
    %295 = arith.divf %293, %294 : vector<1x32xf32>
    %296 = math.tanh %290 : vector<1x32xf32>
    %297 = arith.mulf %295, %296 : vector<1x32xf32>
    %298 = arith.index_cast %256 : i32 to index
    %c0_124 = arith.constant 0 : index
    %299 = vector.load %arg7[%298, %c0_124] : memref<8x32xf32, #tpu.memory_space<vmem>>, vector<1x32xf32>
    tpu.vector_store %arg7[%298, %c0_124], %297 {strides = array<i32>} : memref<8x32xf32, #tpu.memory_space<vmem>>, vector<1x32xf32>,
    %c6_i32 = arith.constant 6 : i32
    %c1_i32_125 = arith.constant 1 : i32
    %300 = arith.muli %c6_i32, %c1_i32_125 : i32
    %c0_126 = arith.constant 0 : index
    %301 = arith.index_cast %300 : i32 to index
    %c0_127 = arith.constant 0 : index
    %302 = vector.load %arg10[%c0_126, %301, %c0_127] : memref<4x8x32xf32, #tpu.memory_space<vmem>>, vector<1x1x32xf32>
    %303 = vector.shape_cast %302 : vector<1x1x32xf32> to vector<1x32xf32>
    %cst_128 = arith.constant dense<0.000000e+00> : vector<1x32xf32>
    %304 = tpu.matmul %297, %27, %cst_128 {dimension_numbers = #tpu.dot_dimension_numbers<[1], [0], [0], [1], [0, 0, 1, 1], [], []>} : vector<1x32xf32>, vector<32x32xf32>, vector<1x32xf32> -> vector<1x32xf32>
    %305 = arith.addf %303, %304 : vector<1x32xf32>
    %c1_129 = arith.constant 1 : index
    %306 = arith.index_cast %300 : i32 to index
    %c0_130 = arith.constant 0 : index
    %307 = vector.load %arg10[%c1_129, %306, %c0_130] : memref<4x8x32xf32, #tpu.memory_space<vmem>>, vector<1x1x32xf32>
    %308 = vector.shape_cast %307 : vector<1x1x32xf32> to vector<1x32xf32>
    %cst_131 = arith.constant dense<0.000000e+00> : vector<1x32xf32>
    %309 = tpu.matmul %297, %29, %cst_131 {dimension_numbers = #tpu.dot_dimension_numbers<[1], [0], [0], [1], [0, 0, 1, 1], [], []>} : vector<1x32xf32>, vector<32x32xf32>, vector<1x32xf32> -> vector<1x32xf32>
    %310 = arith.addf %308, %309 : vector<1x32xf32>
    %c2_132 = arith.constant 2 : index
    %311 = arith.index_cast %300 : i32 to index
    %c0_133 = arith.constant 0 : index
    %312 = vector.load %arg10[%c2_132, %311, %c0_133] : memref<4x8x32xf32, #tpu.memory_space<vmem>>, vector<1x1x32xf32>
    %313 = vector.shape_cast %312 : vector<1x1x32xf32> to vector<1x32xf32>
    %cst_134 = arith.constant dense<0.000000e+00> : vector<1x32xf32>
    %314 = tpu.matmul %297, %31, %cst_134 {dimension_numbers = #tpu.dot_dimension_numbers<[1], [0], [0], [1], [0, 0, 1, 1], [], []>} : vector<1x32xf32>, vector<32x32xf32>, vector<1x32xf32> -> vector<1x32xf32>
    %315 = arith.addf %313, %314 : vector<1x32xf32>
    %c3_135 = arith.constant 3 : index
    %316 = arith.index_cast %300 : i32 to index
    %c0_136 = arith.constant 0 : index
    %317 = vector.load %arg10[%c3_135, %316, %c0_136] : memref<4x8x32xf32, #tpu.memory_space<vmem>>, vector<1x1x32xf32>
    %318 = vector.shape_cast %317 : vector<1x1x32xf32> to vector<1x32xf32>
    %cst_137 = arith.constant dense<0.000000e+00> : vector<1x32xf32>
    %319 = tpu.matmul %297, %33, %cst_137 {dimension_numbers = #tpu.dot_dimension_numbers<[1], [0], [0], [1], [0, 0, 1, 1], [], []>} : vector<1x32xf32>, vector<32x32xf32>, vector<1x32xf32> -> vector<1x32xf32>
    %320 = arith.addf %318, %319 : vector<1x32xf32>
    %321 = arith.negf %305 : vector<1x32xf32>
    %322 = math.exp %321 : vector<1x32xf32>
    %cst_138 = arith.constant 1.000000e+00 : f32
    %323 = vector.broadcast %cst_138 : f32 to vector<1x32xf32>
    %324 = arith.addf %323, %322 : vector<1x32xf32>
    %325 = arith.divf %323, %324 : vector<1x32xf32>
    %326 = arith.negf %310 : vector<1x32xf32>
    %327 = math.exp %326 : vector<1x32xf32>
    %cst_139 = arith.constant 1.000000e+00 : f32
    %328 = vector.broadcast %cst_139 : f32 to vector<1x32xf32>
    %329 = arith.addf %328, %327 : vector<1x32xf32>
    %330 = arith.divf %328, %329 : vector<1x32xf32>
    %331 = arith.mulf %330, %290 : vector<1x32xf32>
    %332 = math.tanh %315 : vector<1x32xf32>
    %333 = arith.mulf %325, %332 : vector<1x32xf32>
    %334 = arith.addf %331, %333 : vector<1x32xf32>
    %335 = arith.negf %320 : vector<1x32xf32>
    %336 = math.exp %335 : vector<1x32xf32>
    %cst_140 = arith.constant 1.000000e+00 : f32
    %337 = vector.broadcast %cst_140 : f32 to vector<1x32xf32>
    %338 = arith.addf %337, %336 : vector<1x32xf32>
    %339 = arith.divf %337, %338 : vector<1x32xf32>
    %340 = math.tanh %334 : vector<1x32xf32>
    %341 = arith.mulf %339, %340 : vector<1x32xf32>
    %342 = arith.index_cast %300 : i32 to index
    %c0_141 = arith.constant 0 : index
    %343 = vector.load %arg7[%342, %c0_141] : memref<8x32xf32, #tpu.memory_space<vmem>>, vector<1x32xf32>
    tpu.vector_store %arg7[%342, %c0_141], %341 {strides = array<i32>} : memref<8x32xf32, #tpu.memory_space<vmem>>, vector<1x32xf32>,
    %c7_i32 = arith.constant 7 : i32
    %c1_i32_142 = arith.constant 1 : i32
    %344 = arith.muli %c7_i32, %c1_i32_142 : i32
    %c0_143 = arith.constant 0 : index
    %345 = arith.index_cast %344 : i32 to index
    %c0_144 = arith.constant 0 : index
    %346 = vector.load %arg10[%c0_143, %345, %c0_144] : memref<4x8x32xf32, #tpu.memory_space<vmem>>, vector<1x1x32xf32>
    %347 = vector.shape_cast %346 : vector<1x1x32xf32> to vector<1x32xf32>
    %cst_145 = arith.constant dense<0.000000e+00> : vector<1x32xf32>
    %348 = tpu.matmul %341, %27, %cst_145 {dimension_numbers = #tpu.dot_dimension_numbers<[1], [0], [0], [1], [0, 0, 1, 1], [], []>} : vector<1x32xf32>, vector<32x32xf32>, vector<1x32xf32> -> vector<1x32xf32>
    %349 = arith.addf %347, %348 : vector<1x32xf32>
    %c1_146 = arith.constant 1 : index
    %350 = arith.index_cast %344 : i32 to index
    %c0_147 = arith.constant 0 : index
    %351 = vector.load %arg10[%c1_146, %350, %c0_147] : memref<4x8x32xf32, #tpu.memory_space<vmem>>, vector<1x1x32xf32>
    %352 = vector.shape_cast %351 : vector<1x1x32xf32> to vector<1x32xf32>
    %cst_148 = arith.constant dense<0.000000e+00> : vector<1x32xf32>
    %353 = tpu.matmul %341, %29, %cst_148 {dimension_numbers = #tpu.dot_dimension_numbers<[1], [0], [0], [1], [0, 0, 1, 1], [], []>} : vector<1x32xf32>, vector<32x32xf32>, vector<1x32xf32> -> vector<1x32xf32>
    %354 = arith.addf %352, %353 : vector<1x32xf32>
    %c2_149 = arith.constant 2 : index
    %355 = arith.index_cast %344 : i32 to index
    %c0_150 = arith.constant 0 : index
    %356 = vector.load %arg10[%c2_149, %355, %c0_150] : memref<4x8x32xf32, #tpu.memory_space<vmem>>, vector<1x1x32xf32>
    %357 = vector.shape_cast %356 : vector<1x1x32xf32> to vector<1x32xf32>
    %cst_151 = arith.constant dense<0.000000e+00> : vector<1x32xf32>
    %358 = tpu.matmul %341, %31, %cst_151 {dimension_numbers = #tpu.dot_dimension_numbers<[1], [0], [0], [1], [0, 0, 1, 1], [], []>} : vector<1x32xf32>, vector<32x32xf32>, vector<1x32xf32> -> vector<1x32xf32>
    %359 = arith.addf %357, %358 : vector<1x32xf32>
    %c3_152 = arith.constant 3 : index
    %360 = arith.index_cast %344 : i32 to index
    %c0_153 = arith.constant 0 : index
    %361 = vector.load %arg10[%c3_152, %360, %c0_153] : memref<4x8x32xf32, #tpu.memory_space<vmem>>, vector<1x1x32xf32>
    %362 = vector.shape_cast %361 : vector<1x1x32xf32> to vector<1x32xf32>
    %cst_154 = arith.constant dense<0.000000e+00> : vector<1x32xf32>
    %363 = tpu.matmul %341, %33, %cst_154 {dimension_numbers = #tpu.dot_dimension_numbers<[1], [0], [0], [1], [0, 0, 1, 1], [], []>} : vector<1x32xf32>, vector<32x32xf32>, vector<1x32xf32> -> vector<1x32xf32>
    %364 = arith.addf %362, %363 : vector<1x32xf32>
    %365 = arith.negf %349 : vector<1x32xf32>
    %366 = math.exp %365 : vector<1x32xf32>
    %cst_155 = arith.constant 1.000000e+00 : f32
    %367 = vector.broadcast %cst_155 : f32 to vector<1x32xf32>
    %368 = arith.addf %367, %366 : vector<1x32xf32>
    %369 = arith.divf %367, %368 : vector<1x32xf32>
    %370 = arith.negf %354 : vector<1x32xf32>
    %371 = math.exp %370 : vector<1x32xf32>
    %cst_156 = arith.constant 1.000000e+00 : f32
    %372 = vector.broadcast %cst_156 : f32 to vector<1x32xf32>
    %373 = arith.addf %372, %371 : vector<1x32xf32>
    %374 = arith.divf %372, %373 : vector<1x32xf32>
    %375 = arith.mulf %374, %334 : vector<1x32xf32>
    %376 = math.tanh %359 : vector<1x32xf32>
    %377 = arith.mulf %369, %376 : vector<1x32xf32>
    %378 = arith.addf %375, %377 : vector<1x32xf32>
    %379 = arith.negf %364 : vector<1x32xf32>
    %380 = math.exp %379 : vector<1x32xf32>
    %cst_157 = arith.constant 1.000000e+00 : f32
    %381 = vector.broadcast %cst_157 : f32 to vector<1x32xf32>
    %382 = arith.addf %381, %380 : vector<1x32xf32>
    %383 = arith.divf %381, %382 : vector<1x32xf32>
    %384 = math.tanh %378 : vector<1x32xf32>
    %385 = arith.mulf %383, %384 : vector<1x32xf32>
    %386 = arith.index_cast %344 : i32 to index
    %c0_158 = arith.constant 0 : index
    %387 = vector.load %arg7[%386, %c0_158] : memref<8x32xf32, #tpu.memory_space<vmem>>, vector<1x32xf32>
    tpu.vector_store %arg7[%386, %c0_158], %385 {strides = array<i32>} : memref<8x32xf32, #tpu.memory_space<vmem>>, vector<1x32xf32>,
    %c8_i32 = arith.constant 8 : i32
    %c0_159 = arith.constant 0 : index
    %c0_160 = arith.constant 0 : index
    %388 = vector.load %arg8[%c0_159, %c0_160] : memref<1x32xf32, #tpu.memory_space<vmem>>, vector<1x32xf32>
    tpu.vector_store %arg8[%c0_159, %c0_160], %385 {strides = array<i32>} : memref<1x32xf32, #tpu.memory_space<vmem>>, vector<1x32xf32>,
    %c0_161 = arith.constant 0 : index
    %c0_162 = arith.constant 0 : index
    %389 = vector.load %arg9[%c0_161, %c0_162] : memref<1x32xf32, #tpu.memory_space<vmem>>, vector<1x32xf32>
    tpu.vector_store %arg9[%c0_161, %c0_162], %378 {strides = array<i32>} : memref<1x32xf32, #tpu.memory_space<vmem>>, vector<1x32xf32>,
    return
  }
  func.func @transform_0(%arg0: i32) -> (i32, i32) {
    %c0_i32 = arith.constant 0 : i32
    %c0_i32_0 = arith.constant 0 : i32
    return %arg0, %c0_i32 : i32, i32
  }
  func.func @transform_1(%arg0: i32) -> (i32, i32) {
    %c0_i32 = arith.constant 0 : i32
    %c0_i32_0 = arith.constant 0 : i32
    %c0_i32_1 = arith.constant 0 : i32
    return %c0_i32, %c0_i32_0 : i32, i32
  }
  func.func @transform_2(%arg0: i32) -> (i32, i32) {
    %c0_i32 = arith.constant 0 : i32
    %c0_i32_0 = arith.constant 0 : i32
    %c0_i32_1 = arith.constant 0 : i32
    return %c0_i32, %c0_i32_0 : i32, i32
  }
  func.func @transform_3(%arg0: i32) -> (i32, i32) {
    %c0_i32 = arith.constant 0 : i32
    %c0_i32_0 = arith.constant 0 : i32
    %c0_i32_1 = arith.constant 0 : i32
    return %c0_i32, %c0_i32_0 : i32, i32
  }
  func.func @transform_4(%arg0: i32) -> (i32, i32, i32) {
    %c0_i32 = arith.constant 0 : i32
    %c0_i32_0 = arith.constant 0 : i32
    %c0_i32_1 = arith.constant 0 : i32
    %c0_i32_2 = arith.constant 0 : i32
    return %c0_i32, %c0_i32_0, %c0_i32_1 : i32, i32, i32
  }
  func.func @transform_5(%arg0: i32) -> (i32, i32) {
    %c0_i32 = arith.constant 0 : i32
    %c0_i32_0 = arith.constant 0 : i32
    %c0_i32_1 = arith.constant 0 : i32
    return %c0_i32, %c0_i32_0 : i32, i32
  }
  func.func @transform_6(%arg0: i32) -> (i32, i32) {
    %c0_i32 = arith.constant 0 : i32
    %c0_i32_0 = arith.constant 0 : i32
    return %arg0, %c0_i32 : i32, i32
  }
}

</mosaic_0001>

<bundles_post_ra>
// kernel: tpu_custom_call.1
= control target key start
LH: loop header
LB: loop body
LE: loop exit
PB: predicated region body
PF: predicated region fallthrough
CT: control target
= control target key end

     0   :  { %11 = vsyncpa [#allocation6], 0  ;;  %s4063_s0 = inlined_call_operand.hbm [shape: f32[8,16], index: 0, kind: input, shape index: {}]   ;;  %s4064_s1 = inlined_call_operand.vmem [shape: f32[1,32], index: 1, kind: input, shape index: {}]   ;;  %s4065_s2 = inlined_call_operand.vmem [shape: f32[1,32], index: 2, kind: input, shape index: {}]   ;;  %s4066_s3 = inlined_call_operand.hbm [shape: f32[16,128], index: 3, kind: input, shape index: {}]   ;;  %s4067_s4 = inlined_call_operand.hbm [shape: f32[4,32,32], index: 4, kind: input, shape index: {}]   ;;  %s4068_s5 = inlined_call_operand.vmem [shape: f32[1,128], index: 5, kind: input, shape index: {}]   ;;  %s4069_s6 = inlined_call_operand.hbm [shape: f32[8,32], index: 6, kind: output, shape index: {}]  }
   0x1   :  { %12 = vsyncpa [#allocation9], 0 }
   0x2   :  { %13 = vsyncpa [#allocation7], 0  ;;  %s3560_s21 = smov [#allocation8]  }
   0x3   :  { %s33_s22 = sshll.u32 %s3560_s21, 4  ;;  %s34_s22 = int_to_ptr.vmem [resolvable:$true] %s33_s22 }
   0x4   :  { %s3482_s23 = scalar_lea.vmem %s34_s22, 256  ;;  %p3487_p1 = scmp.lt.s32.totalorder %s34_s22, %s34_s22 }
   0x5   :  { %p3483_p0 = scmp.ne.s32.totalorder %s34_s22, %s3482_s23  ;;  %p3488_p2 = scmp.lt.s32.totalorder %s3482_s23, %s3482_s23 }
   0x7   :  { %p3489_p3 = por %p3488_p2, %p3487_p1 }
   0x9   :  { %p3490_p4 = pnand %p3489_p3, %p3483_p0 }
   0xb   :  { %3493 = shalt.err (!%p3490_p4)
}
   0xc   :  { %s3561_s24 = smov 128   ;;  %s3562_s25 = smov 8  }
   0xd   :  { %39 = dma.hbm_to_vmem [thread:$0]  %s4066_s3, 256, %s34_s22, [#allocation9], %s3561_s24, %s3561_s24, %s3562_s25  }
   0xe   :  { %s3563_s28 = smov [#allocation5]   ;;  %s3564_s30 = smov [#allocation10]  }
   0xf   :  { %s20_s29 = sshll.u32 %s3563_s28, 4  ;;  %s45_s7 = sshll.u32 %s3564_s30, 4  ;;  %s21_s29 = int_to_ptr.vmem [resolvable:$true] %s20_s29  ;;  %s46_s7 = int_to_ptr.vmem [resolvable:$true] %s45_s7 }
  0x10   :  { %s3502_s8 = scalar_lea.vmem %s21_s29, 128  ;;  %p3507_p6 = scmp.lt.s32.totalorder %s21_s29, %s21_s29 }
  0x11   :  { %p3503_p5 = scmp.ne.s32.totalorder %s21_s29, %s3502_s8  ;;  %p3508_p7 = scmp.lt.s32.totalorder %s3502_s8, %s3502_s8 }
  0x13   :  { %p3509_p8 = por %p3508_p7, %p3507_p6 }
  0x15   :  { %p3510_p9 = pnand %p3509_p8, %p3503_p5 }
  0x17   :  { %3513 = shalt.err (!%p3510_p9)
}
  0x18   :  { %23 = dma.hbm_to_vmem [thread:$0]  %s4063_s0, 128, %s21_s29, [#allocation6]  }
  0x19   :  { %s3522_s11 = scalar_lea.vmem %s46_s7, 2048  ;;  %p3527_p11 = scmp.lt.s32.totalorder %s46_s7, %s46_s7 }
  0x1a   :  { %p3523_p10 = scmp.ne.s32.totalorder %s46_s7, %s3522_s11  ;;  %p3528_p12 = scmp.lt.s32.totalorder %s3522_s11, %s3522_s11 }
  0x1c   :  { %p3529_p13 = por %p3528_p12, %p3527_p11 }
  0x1e   :  { %p3530_p0 = pnand %p3529_p13, %p3523_p10 }
  0x20   :  { %3533 = shalt.err (!%p3530_p0)
}
  0x21   :  { %51 = dma.hbm_to_vmem [thread:$0]  %s4067_s4, 2048, %s46_s7, [#allocation9], %s3561_s24, %s3561_s24, %s3562_s25  }
  0x22   :  { %3554 = dma.done.wait [#allocation6], 128  }
  0x23   :  { %3555 = vsyncadd [#allocation6], 4294967168 }
  0x24   :  { %3556 = dma.done.wait [#allocation9], 2304  }
  0x25   :  { %3557 = vsyncadd [#allocation9], 4294964992  ;;  %v3565_v0 = vmov 0.0   ;;  %vm3566_vm0 = vmmov 0   ;;  %v74_v1 = vld [vmem:[#allocation8 + $0x8] sm:$0xff]  ;;  %v73_v2 = vld [vmem:[#allocation8] sm:$0xff] }
  0x26   :  { %2960 = vmatprep.subr.mxu0 %v3565_v0  ;;  %2964 = vmatprep.mubr.msk.f32.mxu0 %vm3566_vm0, %v3565_v0  ;;  %vm68_vm1 = vcmask 253952   ;;  %v72_v3 = vld [vmem:[#allocation5] sm:$0xff]  ;;  %vm82_vm2 = vcmask 130048   ;;  %v3621_v4 = vld [vmem:[#allocation10 + $0x18] sm:$0xff]  ;;  %v3623_v5 = vld [vmem:[#allocation10 + $0x10] sm:$0xff]  ;;  %vm156_vm3 = vcmask 261120  }
  0x27   :  { %2967 = vmatprep.subr.mxu1 %v3565_v0  ;;  %2975 = vmatprep.mubr.msk.f32.mxu1 %vm3566_vm0, %v3565_v0  ;;  %v67_v6 = vld [vmem:[%s4064_s1] sm:$0x1]  ;;  %v3631_v7 = vld [vmem:[#allocation10 + $0x8] sm:$0xff]  ;;  %v3634_v8 = vld [vmem:[#allocation10 + $0x38] sm:$0xff]  ;;  %s3567_s14 = smov 32   ;;  %s3568_s15 = smov 96  }
  0x28   :  { %2961 = vmatpush3.msra.mxu0 %v74_v1  ;;  %2968 = vmatpush3.msra.mxu1 %v3621_v4  ;;  %69 = vst.msk [vmem:[#allocation2] sm:$0x1] %vm68_vm1, %v67_v6  ;;  %v3638_v9 = vld [vmem:[#allocation10] sm:$0xff]  ;;  %v3641_v10 = vld [vmem:[#allocation10 + $0x30] sm:$0xff]  ;;  %v3647_v11 = vld [vmem:[#allocation10 + $0x28] sm:$0xff]  ;;  %s3569_s16 = smov 64  }
  0x29   :  { %2962 = vmatprep.subr.mxu0 %v3565_v0  ;;  %2969 = vmatprep.subr.mxu1 %v3565_v0  ;;  %v3652_v12 = vld [vmem:[#allocation10 + $0x20] sm:$0xff]  ;;  %v3656_v13 = vld [vmem:[#allocation10 + $0x58] sm:$0xff]  ;;  %v3666_v16 = vld [vmem:[#allocation10 + $0x50] sm:$0xff] }
  0x2a   :  { %2963 = vmatpush3.msra.mxu0 %v73_v2  ;;  %2970 = vmatpush3.msra.mxu1 %v3623_v5  ;;  %v3662_v15 = vld [vmem:[#allocation10 + $0x78] sm:$0xff]  ;;  %v3670_v17 = vld [vmem:[#allocation10 + $0x70] sm:$0xff]  ;;  %v3675_v18 = vld [vmem:[#allocation10 + $0x68] sm:$0xff] }
  0x2b   :  { %2965 = vmatmul.mubr.msk.f32.vlgmr.msra.gmra.mxu0 %vm82_vm2, %v72_v3  ;;  %2971 = vmatprep.subr.mxu1 %v3565_v0  ;;  %v3678_v19 = vld [vmem:[#allocation10 + $0x48] sm:$0xff]  ;;  %v3684_v20 = vld [vmem:[#allocation10 + $0x60] sm:$0xff] }
  0x2c   :  { %2978 = vmatprep.subr.mxu0 %v3565_v0  ;;  %2972 = vmatpush3.msra.mxu1 %v3631_v7  ;;  %v3687_v21 = vld [vmem:[#allocation10 + $0x40] sm:$0xff] }
  0x2d   :  { %2979 = vmatpush3.msra.mxu0 %v3634_v8  ;;  %2973 = vmatprep.subr.mxu1 %v3565_v0  ;;  %v2739_v22 = vld [vmem:[%s4068_s5] ss:$0 sm:$0xff] }
  0x2e   :  { %2980 = vmatprep.subr.mxu0 %v3565_v0  ;;  %2974 = vmatpush3.msra.mxu1 %v3638_v9  ;;  %v70_v32 = vld [vmem:[%s4065_s2] sm:$0x1]  ;;  %s3570_s2 = smov [#allocation11]  }
  0x2f   :  { %2981 = vmatpush3.msra.mxu0 %v3641_v10  ;;  %2986 = vmatprep.mubr.msk.f32.mxu0 %vm3566_vm0, %v3565_v0  ;;  %v190_v14 = vld [vmem:[#allocation2] sm:$0x1]  ;;  %71 = vst.msk [vmem:[#allocation3] sm:$0x1] %vm68_vm1, %v70_v32  ;;  %s2729_s5 = sshll.u32 %s3570_s2, 4  ;;  %s2730_s5 = int_to_ptr.vmem [resolvable:$true] %s2729_s5 }
  0x30   :  { %2982 = vmatprep.subr.mxu0 %v3565_v0  ;;  %2989 = vmatprep.subr.mxu1 %v3565_v0  ;;  %s3534_s19 = scalar_lea.vmem %s2730_s5, 128  ;;  %p3539_p2 = scmp.lt.s32.totalorder %s2730_s5, %s2730_s5 }
  0x31   :  { %2983 = vmatpush3.msra.mxu0 %v3647_v11  ;;  %2976 = vmatmul.mubr.msk.f32.vlgmr.msra.gmra.mxu1 %vm156_vm3, %v190_v14  ;;  %p3535_p1 = scmp.ne.s32.totalorder %s2730_s5, %s3534_s19  ;;  %p3540_p3 = scmp.lt.s32.totalorder %s3534_s19, %s3534_s19 }
  0x32   :  { %2984 = vmatprep.subr.mxu0 %v3565_v0  ;;  %2990 = vmatpush3.msra.mxu1 %v3656_v13 }
  0x33   :  { %2985 = vmatpush3.msra.mxu0 %v3652_v12  ;;  %2991 = vmatprep.subr.mxu1 %v3565_v0  ;;  %p3541_p4 = por %p3540_p3, %p3539_p2 }
  0x34   :  { %3000 = vmatprep.subr.mxu0 %v3565_v0  ;;  %2987 = vmatmul.mubr.msk.f32.vlgmr.msra.gmra.mxu0 %vm156_vm3, %v190_v14 }
  0x35   :  { %3001 = vmatpush3.msra.mxu0 %v3662_v15  ;;  %2992 = vmatpush3.msra.mxu1 %v3666_v16  ;;  %p3542_p5 = pnand %p3541_p4, %p3535_p1 }
  0x36   :  { %3002 = vmatprep.subr.mxu0 %v3565_v0  ;;  %3008 = vmatprep.mubr.msk.f32.mxu0 %vm3566_vm0, %v3565_v0  ;;  %v191_v55 = vld [vmem:[#allocation3] sm:$0x1] }
  0x37   :  { %3003 = vmatpush3.msra.mxu0 %v3670_v17  ;;  %2993 = vmatprep.subr.mxu1 %v3565_v0 }
  0x38   :  { %3004 = vmatprep.subr.mxu0 %v3565_v0  ;;  %2994 = vmatpush3.msra.mxu1 %v3678_v19 }
  0x39   :  { %3005 = vmatpush3.msra.mxu0 %v3675_v18  ;;  %2995 = vmatprep.subr.mxu1 %v3565_v0 }
  0x3a   :  { %3006 = vmatprep.subr.mxu0 %v3565_v0  ;;  %2996 = vmatpush3.msra.mxu1 %v3687_v21 }
  0x3b   :  { %3007 = vmatpush3.msra.mxu0 %v3684_v20  ;;  %2997 = vmatprep.mubr.msk.f32.mxu1 %vm3566_vm0, %v3565_v0 }
  0x3c   :  { %3009 = vmatmul.mubr.msk.f32.vlgmr.msra.gmra.mxu0 %vm156_vm3, %v190_v14  ;;  %2998 = vmatmul.mubr.msk.f32.vlgmr.msra.gmra.mxu1 %vm156_vm3, %v190_v14 }
  0x3d   :  { %3011 = vmatprep.subr.mxu1 %v3565_v0  ;;  %3022 = vmatprep.subr.mxu0 %v3565_v0 }
  0x3e   :  { %3012 = vmatpush3.msra.mxu1 %v3621_v4  ;;  %3023 = vmatpush3.msra.mxu0 %v3634_v8 }
  0x3f   :  { %3013 = vmatprep.subr.mxu1 %v3565_v0  ;;  %3024 = vmatprep.subr.mxu0 %v3565_v0 }
  0x40   :  { %3014 = vmatpush3.msra.mxu1 %v3623_v5  ;;  %3025 = vmatpush3.msra.mxu0 %v3641_v10 }
  0x41   :  { %3015 = vmatprep.subr.mxu1 %v3565_v0  ;;  %3026 = vmatprep.subr.mxu0 %v3565_v0 }
  0x42   :  { %3016 = vmatpush3.msra.mxu1 %v3631_v7  ;;  %3027 = vmatpush3.msra.mxu0 %v3647_v11 }
  0x43   :  { %3017 = vmatprep.subr.mxu1 %v3565_v0  ;;  %3028 = vmatprep.subr.mxu0 %v3565_v0 }
  0x44   :  { %3018 = vmatpush3.msra.mxu1 %v3638_v9  ;;  %3029 = vmatpush3.msra.mxu0 %v3652_v12 }
  0x45   :  { %3019 = vmatprep.mubr.msk.f32.mxu1 %vm3566_vm0, %v3565_v0  ;;  %3030 = vmatprep.mubr.msk.f32.mxu0 %vm3566_vm0, %v3565_v0 }
  0x46   :  { %3033 = vmatprep.subr.mxu1 %v3565_v0  ;;  %3044 = vmatprep.subr.mxu0 %v3565_v0 }
  0xeb   :  { %v152_v23 = vpop.f32.mrf.mxu0 }
  0xec   :  { %v153_v24 = vadd.f32 %v2739_v22, %v152_v23 }
  0xed   :  { %v2966_v25 = vpop.f32.mrf.mxu0 }
  0xee   :  { %157 = vst.msk [vmem:[#allocation4] sm:$0xff] %vm156_vm3, %v153_v24  ;;  %169 = vrot.lane.b32.xlu1 %v153_v24, %s3567_s14  ;;  %159 = vrot.lane.b32.xlu0 %v153_v24, %s3568_s15 }
  0xf1   :  { %v262_v26 = vpop.f32.mrf.mxu1 }
  0xf2   :  { %164 = vrot.lane.b32.xlu0 %v153_v24, %s3569_s16 }
  0xf3   :  { %v2977_v28 = vpop.f32.mrf.mxu1 }
  0xf4   :  { %v334_v27 = vpop.f32.mrf.mxu0 }
  0xf5   :  { %v192_v35 = vld [vmem:[#allocation4] sm:$0x1]  ;;  %v509_v2 = vld [vmem:[#allocation4 + $0x1] sm:$0x1] }
  0xf6   :  { %v2988_v29 = vpop.f32.mrf.mxu0  ;;  %v266_v36 = vadd.f32 %v262_v26, %v192_v35 }
  0xf8   :  { %v2745_v39 = vmul.f32 -1.442695, %v266_v36 }
  0xfa   :  { %3330 = vpow2.f32 %v2745_v39 }
  0xfc   :  { %v478_v30 = vpop.f32.mrf.mxu0  ;;  %v406_v31 = vpop.f32.mrf.mxu1 }
  0xfe   :  { %v3010_v33 = vpop.f32.mrf.mxu0  ;;  %v2999_v34 = vpop.f32.mrf.mxu1 }
 0x107   :  { %v3331_v47 = vpop.eup %3330 }
 0x108   :  { %v486_v50 = vadd.f32 1.0, %v3331_v47 }
 0x160   :  { %v170_v37 = vpop.permute.xlu1 %169  ;;  %v160_v38 = vpop.permute.xlu0 %159 }
 0x161   :  { %173 = vst.msk [vmem:[#allocation4 + $0x18] sm:$0xff] %vm156_vm3, %v170_v37  ;;  %163 = vst.msk [vmem:[#allocation4 + $0x8] sm:$0xff] %vm156_vm3, %v160_v38 }
 0x164   :  { %v165_v40 = vpop.permute.xlu0 %164 }
 0x165   :  { %168 = vst.msk [vmem:[#allocation4 + $0x10] sm:$0xff] %vm156_vm3, %v165_v40 }
 0x168   :  { %v267_v41 = vld [vmem:[#allocation4 + $0x8] sm:$0x1]  ;;  %v411_v44 = vld [vmem:[#allocation4 + $0x18] sm:$0x1]  ;;  %v584_v6 = vld [vmem:[#allocation4 + $0x9] sm:$0x1] }
 0x169   :  { %v338_v42 = vadd.f32 %v334_v27, %v267_v41  ;;  %v482_v45 = vadd.f32 %v478_v30, %v411_v44  ;;  %v728_v30 = vld [vmem:[#allocation4 + $0x19] sm:$0x1] }
 0x16b   :  { %v2746_v43 = vmul.f32 -1.442695, %v338_v42  ;;  %v2747_v48 = vmul.f32 -1.442695, %v482_v45 }
 0x16c   :  { %v339_v46 = vld [vmem:[#allocation4 + $0x10] sm:$0x1]  ;;  %v656_v34 = vld [vmem:[#allocation4 + $0x11] sm:$0x1] }
 0x16d   :  { %3332 = vpow2.f32 %v2746_v43  ;;  %v410_v49 = vadd.f32 %v406_v31, %v339_v46 }
 0x16e   :  { %3334 = vpow2.f32 %v2747_v48 }
 0x16f   :  { %3336 = vtanh.f32 %v410_v49 }
 0x170   :  { %3338 = vrcp.f32 %v486_v50 }
 0x17a   :  { %v3333_v51 = vpop.eup %3332 }
 0x17b   :  { %v492_v52 = vadd.f32 1.0, %v3333_v51  ;;  %v3335_v53 = vpop.eup %3334 }
 0x17c   :  { %v3337_v54 = vpop.eup %3336  ;;  %v502_v58 = vadd.f32 1.0, %v3335_v53 }
 0x17d   :  { %3340 = vrcp.f32 %v492_v52  ;;  %v3339_v56 = vpop.eup %3338  ;;  %v825_v52 = vld [vmem:[#allocation4 + $0x2] sm:$0x1] }
 0x17e   :  { %v497_v60 = vmul.f32 %v3339_v56, %v3337_v54  ;;  %3342 = vrcp.f32 %v502_v58  ;;  %v900_v54 = vld [vmem:[#allocation4 + $0xa] sm:$0x1] }
 0x18a   :  { %v3341_v57 = vpop.eup %3340 }
 0x18b   :  { %v495_v59 = vmul.f32 %v3341_v57, %v191_v55  ;;  %v3343_v62 = vpop.eup %3342 }
 0x18d   :  { %v3732_v61 = vadd.f32 %v497_v60, %v495_v59 }
 0x18f   :  { %3344 = vtanh.f32 %v3732_v61 }
 0x19c   :  { %v3345_v63 = vpop.eup %3344 }
 0x19d   :  { %v506_v1 = vmul.f32 %v3345_v63, %v3343_v62 }
 0x19f   :  { %3020 = vmatmul.mubr.msk.f32.vlgmr.msra.gmra.mxu1 %vm156_vm3, %v506_v1  ;;  %508 = vst.msk [vmem:[#allocation11] sm:$0x1] %vm68_vm1, %v506_v1  ;;  %3031 = vmatmul.mubr.msk.f32.vlgmr.msra.gmra.mxu0 %vm156_vm3, %v506_v1 }
 0x1a0   :  { %3034 = vmatpush3.msra.mxu1 %v3656_v13  ;;  %3045 = vmatpush3.msra.mxu0 %v3662_v15 }
 0x1a1   :  { %3035 = vmatprep.subr.mxu1 %v3565_v0  ;;  %3046 = vmatprep.subr.mxu0 %v3565_v0 }
 0x1a2   :  { %3036 = vmatpush3.msra.mxu1 %v3666_v16  ;;  %3047 = vmatpush3.msra.mxu0 %v3670_v17 }
 0x1a3   :  { %3037 = vmatprep.subr.mxu1 %v3565_v0  ;;  %3048 = vmatprep.subr.mxu0 %v3565_v0 }
 0x1a4   :  { %3038 = vmatpush3.msra.mxu1 %v3678_v19  ;;  %3049 = vmatpush3.msra.mxu0 %v3675_v18 }
 0x1a5   :  { %3039 = vmatprep.subr.mxu1 %v3565_v0  ;;  %3050 = vmatprep.subr.mxu0 %v3565_v0 }
 0x1a6   :  { %3040 = vmatpush3.msra.mxu1 %v3687_v21  ;;  %3041 = vmatprep.mubr.msk.f32.mxu1 %vm3566_vm0, %v3565_v0 }
 0x1a7   :  { %3051 = vmatpush3.msra.mxu0 %v3684_v20  ;;  %3052 = vmatprep.mubr.msk.f32.mxu0 %vm3566_vm0, %v3565_v0 }
 0x1a8   :  { %3042 = vmatmul.mubr.msk.f32.vlgmr.msra.gmra.mxu1 %vm156_vm3, %v506_v1  ;;  %3053 = vmatmul.mubr.msk.f32.vlgmr.msra.gmra.mxu0 %vm156_vm3, %v506_v1  ;;  %v1044_v1 = vld [vmem:[#allocation4 + $0x1a] sm:$0x1] }
 0x1a9   :  { %3055 = vmatprep.subr.mxu1 %v3565_v0  ;;  %3066 = vmatprep.subr.mxu0 %v3565_v0 }
 0x1aa   :  { %3056 = vmatpush3.msra.mxu1 %v3621_v4  ;;  %3067 = vmatpush3.msra.mxu0 %v3634_v8 }
 0x1ab   :  { %3057 = vmatprep.subr.mxu1 %v3565_v0  ;;  %3068 = vmatprep.subr.mxu0 %v3565_v0 }
 0x1ac   :  { %3058 = vmatpush3.msra.mxu1 %v3623_v5  ;;  %3069 = vmatpush3.msra.mxu0 %v3641_v10 }
 0x1ad   :  { %3059 = vmatprep.subr.mxu1 %v3565_v0  ;;  %3070 = vmatprep.subr.mxu0 %v3565_v0 }
 0x1ae   :  { %3060 = vmatpush3.msra.mxu1 %v3631_v7  ;;  %3071 = vmatpush3.msra.mxu0 %v3647_v11 }
 0x1af   :  { %3061 = vmatprep.subr.mxu1 %v3565_v0  ;;  %3072 = vmatprep.subr.mxu0 %v3565_v0 }
 0x1b0   :  { %3062 = vmatpush3.msra.mxu1 %v3638_v9  ;;  %3073 = vmatpush3.msra.mxu0 %v3652_v12 }
 0x1b1   :  { %3063 = vmatprep.mubr.msk.f32.mxu1 %vm3566_vm0, %v3565_v0  ;;  %3074 = vmatprep.mubr.msk.f32.mxu0 %vm3566_vm0, %v3565_v0 }
 0x1b2   :  { %3077 = vmatprep.subr.mxu1 %v3565_v0  ;;  %3088 = vmatprep.subr.mxu0 %v3565_v0 }
 0x25f   :  { %v579_v3 = vpop.f32.mrf.mxu1  ;;  %v651_v14 = vpop.f32.mrf.mxu0 }
 0x260   :  { %v583_v22 = vadd.f32 %v579_v3, %v509_v2  ;;  %v655_v23 = vadd.f32 %v651_v14, %v584_v6  ;;  %v972_v14 = vld [vmem:[#allocation4 + $0x12] sm:$0x1] }
 0x261   :  { %v3021_v24 = vpop.f32.mrf.mxu1  ;;  %v3032_v25 = vpop.f32.mrf.mxu0 }
 0x262   :  { %v2752_v26 = vmul.f32 -1.442695, %v583_v22  ;;  %v2753_v27 = vmul.f32 -1.442695, %v655_v23 }
 0x264   :  { %3346 = vpow2.f32 %v2752_v26 }
 0x265   :  { %3348 = vpow2.f32 %v2753_v27 }
 0x268   :  { %v723_v28 = vpop.f32.mrf.mxu1  ;;  %v795_v29 = vpop.f32.mrf.mxu0 }
 0x269   :  { %v799_v31 = vadd.f32 %v795_v29, %v728_v30  ;;  %v727_v36 = vadd.f32 %v723_v28, %v656_v34 }
 0x26a   :  { %v3043_v32 = vpop.f32.mrf.mxu1  ;;  %v3054_v33 = vpop.f32.mrf.mxu0 }
 0x26b   :  { %v2754_v35 = vmul.f32 -1.442695, %v799_v31 }
 0x26d   :  { %3350 = vpow2.f32 %v2754_v35 }
 0x26e   :  { %3352 = vtanh.f32 %v727_v36 }
 0x271   :  { %v3347_v37 = vpop.eup %3346 }
 0x272   :  { %v3349_v38 = vpop.eup %3348  ;;  %v803_v39 = vadd.f32 1.0, %v3347_v37 }
 0x273   :  { %v809_v40 = vadd.f32 1.0, %v3349_v38 }
 0x274   :  { %3354 = vrcp.f32 %v803_v39  ;;  %v1141_v39 = vld [vmem:[#allocation4 + $0x3] sm:$0x1] }
 0x275   :  { %3356 = vrcp.f32 %v809_v40 }
 0x27a   :  { %v3351_v41 = vpop.eup %3350 }
 0x27b   :  { %v3353_v42 = vpop.eup %3352  ;;  %v819_v46 = vadd.f32 1.0, %v3351_v41  ;;  %v1216_v41 = vld [vmem:[#allocation4 + $0xb] sm:$0x1] }
 0x27d   :  { %3358 = vrcp.f32 %v819_v46 }
 0x281   :  { %v3355_v43 = vpop.eup %3354 }
 0x282   :  { %v3357_v44 = vpop.eup %3356  ;;  %v814_v45 = vmul.f32 %v3355_v43, %v3353_v42 }
 0x283   :  { %v812_v47 = vmul.f32 %v3357_v44, %v3732_v61 }
 0x285   :  { %v3781_v48 = vadd.f32 %v814_v45, %v812_v47 }
 0x287   :  { %3360 = vtanh.f32 %v3781_v48 }
 0x28a   :  { %v3359_v49 = vpop.eup %3358 }
 0x294   :  { %v3361_v50 = vpop.eup %3360 }
 0x295   :  { %v823_v51 = vmul.f32 %v3361_v50, %v3359_v49 }
 0x297   :  { %3064 = vmatmul.mubr.msk.f32.vlgmr.msra.gmra.mxu1 %vm156_vm3, %v823_v51  ;;  %824 = vst.msk [vmem:[#allocation11 + $0x1] sm:$0x1] %vm68_vm1, %v823_v51  ;;  %3075 = vmatmul.mubr.msk.f32.vlgmr.msra.gmra.mxu0 %vm156_vm3, %v823_v51 }
 0x298   :  { %3078 = vmatpush3.msra.mxu1 %v3656_v13  ;;  %3089 = vmatpush3.msra.mxu0 %v3662_v15 }
 0x299   :  { %3079 = vmatprep.subr.mxu1 %v3565_v0  ;;  %3090 = vmatprep.subr.mxu0 %v3565_v0 }
 0x29a   :  { %3080 = vmatpush3.msra.mxu1 %v3666_v16  ;;  %3091 = vmatpush3.msra.mxu0 %v3670_v17 }
 0x29b   :  { %3081 = vmatprep.subr.mxu1 %v3565_v0  ;;  %3092 = vmatprep.subr.mxu0 %v3565_v0 }
 0x29c   :  { %3082 = vmatpush3.msra.mxu1 %v3678_v19  ;;  %3093 = vmatpush3.msra.mxu0 %v3675_v18 }
 0x29d   :  { %3083 = vmatprep.subr.mxu1 %v3565_v0  ;;  %3094 = vmatprep.subr.mxu0 %v3565_v0 }
 0x29e   :  { %3084 = vmatpush3.msra.mxu1 %v3687_v21  ;;  %3085 = vmatprep.mubr.msk.f32.mxu1 %vm3566_vm0, %v3565_v0 }
 0x29f   :  { %3095 = vmatpush3.msra.mxu0 %v3684_v20  ;;  %3096 = vmatprep.mubr.msk.f32.mxu0 %vm3566_vm0, %v3565_v0 }
 0x2a0   :  { %3086 = vmatmul.mubr.msk.f32.vlgmr.msra.gmra.mxu1 %vm156_vm3, %v823_v51  ;;  %3097 = vmatmul.mubr.msk.f32.vlgmr.msra.gmra.mxu0 %vm156_vm3, %v823_v51  ;;  %v1360_v51 = vld [vmem:[#allocation4 + $0x1b] sm:$0x1] }
 0x2a1   :  { %3099 = vmatprep.subr.mxu1 %v3565_v0  ;;  %3110 = vmatprep.subr.mxu0 %v3565_v0 }
 0x2a2   :  { %3100 = vmatpush3.msra.mxu1 %v3621_v4  ;;  %3111 = vmatpush3.msra.mxu0 %v3634_v8 }
 0x2a3   :  { %3101 = vmatprep.subr.mxu1 %v3565_v0  ;;  %3112 = vmatprep.subr.mxu0 %v3565_v0 }
 0x2a4   :  { %3102 = vmatpush3.msra.mxu1 %v3623_v5  ;;  %3113 = vmatpush3.msra.mxu0 %v3641_v10 }
 0x2a5   :  { %3103 = vmatprep.subr.mxu1 %v3565_v0  ;;  %3114 = vmatprep.subr.mxu0 %v3565_v0 }
 0x2a6   :  { %3104 = vmatpush3.msra.mxu1 %v3631_v7  ;;  %3115 = vmatpush3.msra.mxu0 %v3647_v11 }
 0x2a7   :  { %3105 = vmatprep.subr.mxu1 %v3565_v0  ;;  %3116 = vmatprep.subr.mxu0 %v3565_v0 }
 0x2a8   :  { %3106 = vmatpush3.msra.mxu1 %v3638_v9  ;;  %3117 = vmatpush3.msra.mxu0 %v3652_v12 }
 0x2a9   :  { %3107 = vmatprep.mubr.msk.f32.mxu1 %vm3566_vm0, %v3565_v0  ;;  %3118 = vmatprep.mubr.msk.f32.mxu0 %vm3566_vm0, %v3565_v0 }
 0x2aa   :  { %3121 = vmatprep.subr.mxu1 %v3565_v0  ;;  %3132 = vmatprep.subr.mxu0 %v3565_v0 }
 0x357   :  { %v895_v53 = vpop.f32.mrf.mxu1  ;;  %v967_v55 = vpop.f32.mrf.mxu0 }
 0x358   :  { %v899_v56 = vadd.f32 %v895_v53, %v825_v52  ;;  %v971_v57 = vadd.f32 %v967_v55, %v900_v54  ;;  %v1288_v55 = vld [vmem:[#allocation4 + $0x13] sm:$0x1] }
 0x359   :  { %v3065_v58 = vpop.f32.mrf.mxu1  ;;  %v3076_v59 = vpop.f32.mrf.mxu0 }
 0x35a   :  { %v2759_v60 = vmul.f32 -1.442695, %v899_v56  ;;  %v2760_v61 = vmul.f32 -1.442695, %v971_v57 }
 0x35c   :  { %3362 = vpow2.f32 %v2759_v60 }
 0x35d   :  { %3364 = vpow2.f32 %v2760_v61 }
 0x360   :  { %v1039_v62 = vpop.f32.mrf.mxu1  ;;  %v1111_v63 = vpop.f32.mrf.mxu0 }
 0x361   :  { %v1115_v2 = vadd.f32 %v1111_v63, %v1044_v1  ;;  %v1043_v23 = vadd.f32 %v1039_v62, %v972_v14 }
 0x362   :  { %v3087_v3 = vpop.f32.mrf.mxu1  ;;  %v3098_v6 = vpop.f32.mrf.mxu0 }
 0x363   :  { %v2761_v22 = vmul.f32 -1.442695, %v1115_v2 }
 0x365   :  { %3366 = vpow2.f32 %v2761_v22 }
 0x366   :  { %3368 = vtanh.f32 %v1043_v23 }
 0x369   :  { %v3363_v24 = vpop.eup %3362 }
 0x36a   :  { %v3365_v25 = vpop.eup %3364  ;;  %v1119_v26 = vadd.f32 1.0, %v3363_v24 }
 0x36b   :  { %v1125_v27 = vadd.f32 1.0, %v3365_v25 }
 0x36c   :  { %3370 = vrcp.f32 %v1119_v26  ;;  %v1457_v26 = vld [vmem:[#allocation4 + $0x4] sm:$0x1] }
 0x36d   :  { %3372 = vrcp.f32 %v1125_v27 }
 0x372   :  { %v3367_v28 = vpop.eup %3366 }
 0x373   :  { %v3369_v29 = vpop.eup %3368  ;;  %v1135_v33 = vadd.f32 1.0, %v3367_v28  ;;  %v1532_v28 = vld [vmem:[#allocation4 + $0xc] sm:$0x1] }
 0x375   :  { %3374 = vrcp.f32 %v1135_v33 }
 0x379   :  { %v3371_v30 = vpop.eup %3370 }
 0x37a   :  { %v3373_v31 = vpop.eup %3372  ;;  %v1130_v32 = vmul.f32 %v3371_v30, %v3369_v29 }
 0x37b   :  { %v1128_v34 = vmul.f32 %v3373_v31, %v3781_v48 }
 0x37d   :  { %v3830_v35 = vadd.f32 %v1130_v32, %v1128_v34 }
 0x37f   :  { %3376 = vtanh.f32 %v3830_v35 }
 0x382   :  { %v3375_v36 = vpop.eup %3374 }
 0x38c   :  { %v3377_v37 = vpop.eup %3376 }
 0x38d   :  { %v1139_v38 = vmul.f32 %v3377_v37, %v3375_v36 }
 0x38f   :  { %3108 = vmatmul.mubr.msk.f32.vlgmr.msra.gmra.mxu1 %vm156_vm3, %v1139_v38  ;;  %1140 = vst.msk [vmem:[#allocation11 + $0x2] sm:$0x1] %vm68_vm1, %v1139_v38  ;;  %3119 = vmatmul.mubr.msk.f32.vlgmr.msra.gmra.mxu0 %vm156_vm3, %v1139_v38 }
 0x390   :  { %3122 = vmatpush3.msra.mxu1 %v3656_v13  ;;  %3133 = vmatpush3.msra.mxu0 %v3662_v15 }
 0x391   :  { %3123 = vmatprep.subr.mxu1 %v3565_v0  ;;  %3134 = vmatprep.subr.mxu0 %v3565_v0 }
 0x392   :  { %3124 = vmatpush3.msra.mxu1 %v3666_v16  ;;  %3135 = vmatpush3.msra.mxu0 %v3670_v17 }
 0x393   :  { %3125 = vmatprep.subr.mxu1 %v3565_v0  ;;  %3136 = vmatprep.subr.mxu0 %v3565_v0 }
 0x394   :  { %3126 = vmatpush3.msra.mxu1 %v3678_v19  ;;  %3137 = vmatpush3.msra.mxu0 %v3675_v18 }
 0x395   :  { %3127 = vmatprep.subr.mxu1 %v3565_v0  ;;  %3138 = vmatprep.subr.mxu0 %v3565_v0 }
 0x396   :  { %3128 = vmatpush3.msra.mxu1 %v3687_v21  ;;  %3129 = vmatprep.mubr.msk.f32.mxu1 %vm3566_vm0, %v3565_v0 }
 0x397   :  { %3139 = vmatpush3.msra.mxu0 %v3684_v20  ;;  %3140 = vmatprep.mubr.msk.f32.mxu0 %vm3566_vm0, %v3565_v0 }
 0x398   :  { %3130 = vmatmul.mubr.msk.f32.vlgmr.msra.gmra.mxu1 %vm156_vm3, %v1139_v38  ;;  %3141 = vmatmul.mubr.msk.f32.vlgmr.msra.gmra.mxu0 %vm156_vm3, %v1139_v38  ;;  %v1676_v38 = vld [vmem:[#allocation4 + $0x1c] sm:$0x1] }
 0x399   :  { %3143 = vmatprep.subr.mxu1 %v3565_v0  ;;  %3154 = vmatprep.subr.mxu0 %v3565_v0 }
 0x39a   :  { %3144 = vmatpush3.msra.mxu1 %v3621_v4  ;;  %3155 = vmatpush3.msra.mxu0 %v3634_v8 }
 0x39b   :  { %3145 = vmatprep.subr.mxu1 %v3565_v0  ;;  %3156 = vmatprep.subr.mxu0 %v3565_v0 }
 0x39c   :  { %3146 = vmatpush3.msra.mxu1 %v3623_v5  ;;  %3157 = vmatpush3.msra.mxu0 %v3641_v10 }
 0x39d   :  { %3147 = vmatprep.subr.mxu1 %v3565_v0  ;;  %3158 = vmatprep.subr.mxu0 %v3565_v0 }
 0x39e   :  { %3148 = vmatpush3.msra.mxu1 %v3631_v7  ;;  %3159 = vmatpush3.msra.mxu0 %v3647_v11 }
 0x39f   :  { %3149 = vmatprep.subr.mxu1 %v3565_v0  ;;  %3160 = vmatprep.subr.mxu0 %v3565_v0 }
 0x3a0   :  { %3150 = vmatpush3.msra.mxu1 %v3638_v9  ;;  %3161 = vmatpush3.msra.mxu0 %v3652_v12 }
 0x3a1   :  { %3151 = vmatprep.mubr.msk.f32.mxu1 %vm3566_vm0, %v3565_v0  ;;  %3162 = vmatprep.mubr.msk.f32.mxu0 %vm3566_vm0, %v3565_v0 }
 0x3a2   :  { %3165 = vmatprep.subr.mxu1 %v3565_v0  ;;  %3176 = vmatprep.subr.mxu0 %v3565_v0 }
 0x44f   :  { %v1211_v40 = vpop.f32.mrf.mxu1  ;;  %v1283_v42 = vpop.f32.mrf.mxu0 }
 0x450   :  { %v1215_v43 = vadd.f32 %v1211_v40, %v1141_v39  ;;  %v1287_v44 = vadd.f32 %v1283_v42, %v1216_v41  ;;  %v1604_v42 = vld [vmem:[#allocation4 + $0x14] sm:$0x1] }
 0x451   :  { %v3109_v45 = vpop.f32.mrf.mxu1  ;;  %v3120_v46 = vpop.f32.mrf.mxu0 }
 0x452   :  { %v2766_v47 = vmul.f32 -1.442695, %v1215_v43  ;;  %v2767_v48 = vmul.f32 -1.442695, %v1287_v44 }
 0x454   :  { %3378 = vpow2.f32 %v2766_v47 }
 0x455   :  { %3380 = vpow2.f32 %v2767_v48 }
 0x458   :  { %v1355_v49 = vpop.f32.mrf.mxu1  ;;  %v1427_v50 = vpop.f32.mrf.mxu0 }
 0x459   :  { %v1431_v52 = vadd.f32 %v1427_v50, %v1360_v51  ;;  %v1359_v57 = vadd.f32 %v1355_v49, %v1288_v55 }
 0x45a   :  { %v3131_v53 = vpop.f32.mrf.mxu1  ;;  %v3142_v54 = vpop.f32.mrf.mxu0 }
 0x45b   :  { %v2768_v56 = vmul.f32 -1.442695, %v1431_v52 }
 0x45d   :  { %3382 = vpow2.f32 %v2768_v56 }
 0x45e   :  { %3384 = vtanh.f32 %v1359_v57 }
 0x461   :  { %v3379_v58 = vpop.eup %3378 }
 0x462   :  { %v3381_v59 = vpop.eup %3380  ;;  %v1435_v60 = vadd.f32 1.0, %v3379_v58 }
 0x463   :  { %v1441_v61 = vadd.f32 1.0, %v3381_v59 }
 0x464   :  { %3386 = vrcp.f32 %v1435_v60  ;;  %v1920_v60 = vld [vmem:[#allocation4 + $0x15] sm:$0x1] }
 0x465   :  { %3388 = vrcp.f32 %v1441_v61 }
 0x46a   :  { %v3383_v62 = vpop.eup %3382 }
 0x46b   :  { %v3385_v63 = vpop.eup %3384  ;;  %v1451_v6 = vadd.f32 1.0, %v3383_v62 }
 0x46d   :  { %3390 = vrcp.f32 %v1451_v6 }
 0x471   :  { %v3387_v1 = vpop.eup %3386 }
 0x472   :  { %v3389_v2 = vpop.eup %3388  ;;  %v1446_v3 = vmul.f32 %v3387_v1, %v3385_v63 }
 0x473   :  { %v1444_v14 = vmul.f32 %v3389_v2, %v3830_v35 }
 0x475   :  { %v3879_v22 = vadd.f32 %v1446_v3, %v1444_v14 }
 0x477   :  { %3392 = vtanh.f32 %v3879_v22 }
 0x47a   :  { %v3391_v23 = vpop.eup %3390 }
 0x484   :  { %v3393_v24 = vpop.eup %3392 }
 0x485   :  { %v1455_v25 = vmul.f32 %v3393_v24, %v3391_v23 }
 0x487   :  { %3152 = vmatmul.mubr.msk.f32.vlgmr.msra.gmra.mxu1 %vm156_vm3, %v1455_v25  ;;  %1456 = vst.msk [vmem:[#allocation11 + $0x3] sm:$0x1] %vm68_vm1, %v1455_v25  ;;  %3163 = vmatmul.mubr.msk.f32.vlgmr.msra.gmra.mxu0 %vm156_vm3, %v1455_v25 }
 0x488   :  { %3166 = vmatpush3.msra.mxu1 %v3656_v13  ;;  %3177 = vmatpush3.msra.mxu0 %v3662_v15 }
 0x489   :  { %3167 = vmatprep.subr.mxu1 %v3565_v0  ;;  %3178 = vmatprep.subr.mxu0 %v3565_v0 }
 0x48a   :  { %3168 = vmatpush3.msra.mxu1 %v3666_v16  ;;  %3179 = vmatpush3.msra.mxu0 %v3670_v17 }
 0x48b   :  { %3169 = vmatprep.subr.mxu1 %v3565_v0  ;;  %3180 = vmatprep.subr.mxu0 %v3565_v0 }
 0x48c   :  { %3170 = vmatpush3.msra.mxu1 %v3678_v19  ;;  %3181 = vmatpush3.msra.mxu0 %v3675_v18 }
 0x48d   :  { %3171 = vmatprep.subr.mxu1 %v3565_v0  ;;  %3182 = vmatprep.subr.mxu0 %v3565_v0 }
 0x48e   :  { %3172 = vmatpush3.msra.mxu1 %v3687_v21  ;;  %3173 = vmatprep.mubr.msk.f32.mxu1 %vm3566_vm0, %v3565_v0 }
 0x48f   :  { %3183 = vmatpush3.msra.mxu0 %v3684_v20  ;;  %3184 = vmatprep.mubr.msk.f32.mxu0 %vm3566_vm0, %v3565_v0 }
 0x490   :  { %3174 = vmatmul.mubr.msk.f32.vlgmr.msra.gmra.mxu1 %vm156_vm3, %v1455_v25  ;;  %3185 = vmatmul.mubr.msk.f32.vlgmr.msra.gmra.mxu0 %vm156_vm3, %v1455_v25 }
 0x491   :  { %3187 = vmatprep.subr.mxu1 %v3565_v0  ;;  %3198 = vmatprep.subr.mxu0 %v3565_v0 }
 0x492   :  { %3188 = vmatpush3.msra.mxu1 %v3621_v4  ;;  %3199 = vmatpush3.msra.mxu0 %v3634_v8 }
 0x493   :  { %3189 = vmatprep.subr.mxu1 %v3565_v0  ;;  %3200 = vmatprep.subr.mxu0 %v3565_v0 }
 0x494   :  { %3190 = vmatpush3.msra.mxu1 %v3623_v5  ;;  %3201 = vmatpush3.msra.mxu0 %v3641_v10 }
 0x495   :  { %3191 = vmatprep.subr.mxu1 %v3565_v0  ;;  %3202 = vmatprep.subr.mxu0 %v3565_v0 }
 0x496   :  { %3192 = vmatpush3.msra.mxu1 %v3631_v7  ;;  %3203 = vmatpush3.msra.mxu0 %v3647_v11 }
 0x497   :  { %3193 = vmatprep.subr.mxu1 %v3565_v0  ;;  %3204 = vmatprep.subr.mxu0 %v3565_v0 }
 0x498   :  { %3194 = vmatpush3.msra.mxu1 %v3638_v9  ;;  %3205 = vmatpush3.msra.mxu0 %v3652_v12 }
 0x499   :  { %3195 = vmatprep.mubr.msk.f32.mxu1 %vm3566_vm0, %v3565_v0  ;;  %3206 = vmatprep.mubr.msk.f32.mxu0 %vm3566_vm0, %v3565_v0 }
 0x49a   :  { %3209 = vmatprep.subr.mxu1 %v3565_v0  ;;  %3220 = vmatprep.subr.mxu0 %v3565_v0 }
 0x547   :  { %v1527_v27 = vpop.f32.mrf.mxu1  ;;  %v1599_v29 = vpop.f32.mrf.mxu0 }
 0x548   :  { %v1531_v30 = vadd.f32 %v1527_v27, %v1457_v26  ;;  %v1603_v31 = vadd.f32 %v1599_v29, %v1532_v28 }
 0x549   :  { %v3153_v32 = vpop.f32.mrf.mxu1  ;;  %v3164_v33 = vpop.f32.mrf.mxu0 }
 0x54a   :  { %v2773_v34 = vmul.f32 -1.442695, %v1531_v30  ;;  %v2774_v35 = vmul.f32 -1.442695, %v1603_v31  ;;  %v3983_v31 = vld [vmem:[#allocation10 + $0x58] sm:$0xff]  ;;  %v3991_v33 = vld [vmem:[#allocation10 + $0x50] sm:$0xff] }
 0x54b   :  { %v3986_v32 = vld [vmem:[#allocation10 + $0x78] sm:$0xff] }
 0x54c   :  { %3394 = vpow2.f32 %v2773_v34  ;;  %v3994_v34 = vld [vmem:[#allocation10 + $0x70] sm:$0xff] }
 0x54d   :  { %3396 = vpow2.f32 %v2774_v35  ;;  %v3999_v35 = vld [vmem:[#allocation10 + $0x48] sm:$0xff] }
 0x550   :  { %v1671_v36 = vpop.f32.mrf.mxu1  ;;  %v1743_v37 = vpop.f32.mrf.mxu0 }
 0x551   :  { %v1747_v39 = vadd.f32 %v1743_v37, %v1676_v38  ;;  %v1675_v44 = vadd.f32 %v1671_v36, %v1604_v42  ;;  %v4002_v36 = vld [vmem:[#allocation10 + $0x68] sm:$0xff]  ;;  %v4007_v37 = vld [vmem:[#allocation10 + $0x40] sm:$0xff]  ;;  %v3469_v42 = vld [vmem:[#allocation10 + $0x30] sm:$0xff] }
 0x552   :  { %v3175_v40 = vpop.f32.mrf.mxu1  ;;  %v3186_v41 = vpop.f32.mrf.mxu0  ;;  %v4012_v38 = vld [vmem:[#allocation10 + $0x60] sm:$0xff] }
 0x553   :  { %v2775_v43 = vmul.f32 -1.442695, %v1747_v39  ;;  %v3466_v39 = vld [vmem:[#allocation10 + $0x18] sm:$0xff]  ;;  %v3468_v41 = vld [vmem:[#allocation10 + $0x10] sm:$0xff] }
 0x554   :  { %v3467_v40 = vld [vmem:[#allocation10 + $0x38] sm:$0xff] }
 0x555   :  { %3398 = vpow2.f32 %v2775_v43  ;;  %v3470_v43 = vld [vmem:[#allocation10 + $0x8] sm:$0xff] }
 0x556   :  { %3400 = vtanh.f32 %v1675_v44  ;;  %v3471_v44 = vld [vmem:[#allocation10 + $0x28] sm:$0xff] }
 0x559   :  { %v3395_v45 = vpop.eup %3394 }
 0x55a   :  { %v3397_v46 = vpop.eup %3396  ;;  %v1751_v47 = vadd.f32 1.0, %v3395_v45  ;;  %v3472_v45 = vld [vmem:[#allocation10] sm:$0xff] }
 0x55b   :  { %v1757_v48 = vadd.f32 1.0, %v3397_v46  ;;  %v3473_v46 = vld [vmem:[#allocation10 + $0x20] sm:$0xff] }
 0x55c   :  { %3402 = vrcp.f32 %v1751_v47  ;;  %v2089_v47 = vld [vmem:[#allocation4 + $0x6] sm:$0x1] }
 0x55d   :  { %3404 = vrcp.f32 %v1757_v48 }
 0x562   :  { %v3399_v49 = vpop.eup %3398 }
 0x563   :  { %v3401_v50 = vpop.eup %3400  ;;  %v1767_v54 = vadd.f32 1.0, %v3399_v49  ;;  %v2164_v49 = vld [vmem:[#allocation4 + $0xe] sm:$0x1] }
 0x565   :  { %3406 = vrcp.f32 %v1767_v54 }
 0x569   :  { %v3403_v51 = vpop.eup %3402 }
 0x56a   :  { %v3405_v52 = vpop.eup %3404  ;;  %v1762_v53 = vmul.f32 %v3403_v51, %v3401_v50 }
 0x56b   :  { %v1760_v55 = vmul.f32 %v3405_v52, %v3879_v22 }
 0x56d   :  { %v3928_v56 = vadd.f32 %v1762_v53, %v1760_v55 }
 0x56f   :  { %3408 = vtanh.f32 %v3928_v56 }
 0x572   :  { %v3407_v57 = vpop.eup %3406 }
 0x57c   :  { %v3409_v58 = vpop.eup %3408 }
 0x57d   :  { %v1771_v59 = vmul.f32 %v3409_v58, %v3407_v57 }
 0x57f   :  { %3196 = vmatmul.mubr.msk.f32.vlgmr.msra.gmra.mxu1 %vm156_vm3, %v1771_v59  ;;  %1772 = vst.msk [vmem:[#allocation11 + $0x4] sm:$0x1] %vm68_vm1, %v1771_v59  ;;  %3207 = vmatmul.mubr.msk.f32.vlgmr.msra.gmra.mxu0 %vm156_vm3, %v1771_v59 }
 0x580   :  { %3210 = vmatpush3.msra.mxu1 %v3656_v13  ;;  %3221 = vmatpush3.msra.mxu0 %v3662_v15 }
 0x581   :  { %3211 = vmatprep.subr.mxu1 %v3565_v0  ;;  %3222 = vmatprep.subr.mxu0 %v3565_v0 }
 0x582   :  { %3212 = vmatpush3.msra.mxu1 %v3666_v16  ;;  %3223 = vmatpush3.msra.mxu0 %v3670_v17 }
 0x583   :  { %3213 = vmatprep.subr.mxu1 %v3565_v0  ;;  %3224 = vmatprep.subr.mxu0 %v3565_v0 }
 0x584   :  { %3214 = vmatpush3.msra.mxu1 %v3678_v19  ;;  %3225 = vmatpush3.msra.mxu0 %v3675_v18  ;;  %v1992_v18 = vld [vmem:[#allocation4 + $0x1d] sm:$0x1] }
 0x585   :  { %3215 = vmatprep.subr.mxu1 %v3565_v0  ;;  %3226 = vmatprep.subr.mxu0 %v3565_v0 }
 0x586   :  { %3216 = vmatpush3.msra.mxu1 %v3687_v21  ;;  %3217 = vmatprep.mubr.msk.f32.mxu1 %vm3566_vm0, %v3565_v0 }
 0x587   :  { %3227 = vmatpush3.msra.mxu0 %v3684_v20  ;;  %3228 = vmatprep.mubr.msk.f32.mxu0 %vm3566_vm0, %v3565_v0 }
 0x588   :  { %3218 = vmatmul.mubr.msk.f32.vlgmr.msra.gmra.mxu1 %vm156_vm3, %v1771_v59  ;;  %3229 = vmatmul.mubr.msk.f32.vlgmr.msra.gmra.mxu0 %vm156_vm3, %v1771_v59  ;;  %v2308_v59 = vld [vmem:[#allocation4 + $0x1e] sm:$0x1] }
 0x589   :  { %3231 = vmatprep.subr.mxu1 %v3565_v0  ;;  %3242 = vmatprep.subr.mxu0 %v3565_v0 }
 0x58a   :  { %3232 = vmatpush3.msra.mxu1 %v3621_v4  ;;  %3243 = vmatpush3.msra.mxu0 %v3634_v8  ;;  %v1773_v4 = vld [vmem:[#allocation4 + $0x5] sm:$0x1] }
 0x58b   :  { %3233 = vmatprep.subr.mxu1 %v3565_v0  ;;  %3244 = vmatprep.subr.mxu0 %v3565_v0 }
 0x58c   :  { %3234 = vmatpush3.msra.mxu1 %v3623_v5  ;;  %3245 = vmatpush3.msra.mxu0 %v3641_v10 }
 0x58d   :  { %3235 = vmatprep.subr.mxu1 %v3565_v0  ;;  %3246 = vmatprep.subr.mxu0 %v3565_v0 }
 0x58e   :  { %3236 = vmatpush3.msra.mxu1 %v3631_v7  ;;  %3247 = vmatpush3.msra.mxu0 %v3647_v11  ;;  %v1848_v7 = vld [vmem:[#allocation4 + $0xd] sm:$0x1] }
 0x58f   :  { %3237 = vmatprep.subr.mxu1 %v3565_v0  ;;  %3248 = vmatprep.subr.mxu0 %v3565_v0 }
 0x590   :  { %3238 = vmatpush3.msra.mxu1 %v3638_v9  ;;  %3249 = vmatpush3.msra.mxu0 %v3652_v12 }
 0x591   :  { %3239 = vmatprep.mubr.msk.f32.mxu1 %vm3566_vm0, %v3565_v0  ;;  %3250 = vmatprep.mubr.msk.f32.mxu0 %vm3566_vm0, %v3565_v0 }
 0x592   :  { %3253 = vmatprep.subr.mxu1 %v3565_v0  ;;  %3264 = vmatprep.subr.mxu0 %v3565_v0 }
 0x63f   :  { %v1843_v5 = vpop.f32.mrf.mxu1  ;;  %v1915_v8 = vpop.f32.mrf.mxu0 }
 0x640   :  { %v1847_v10 = vadd.f32 %v1843_v5, %v1773_v4  ;;  %v1919_v11 = vadd.f32 %v1915_v8, %v1848_v7  ;;  %v2236_v8 = vld [vmem:[#allocation4 + $0x16] sm:$0x1] }
 0x641   :  { %v3197_v13 = vpop.f32.mrf.mxu1  ;;  %v3208_v9 = vpop.f32.mrf.mxu0 }
 0x642   :  { %v2780_v15 = vmul.f32 -1.442695, %v1847_v10  ;;  %v2781_v12 = vmul.f32 -1.442695, %v1919_v11 }
 0x644   :  { %3410 = vpow2.f32 %v2780_v15 }
 0x645   :  { %3412 = vpow2.f32 %v2781_v12 }
 0x648   :  { %v1987_v16 = vpop.f32.mrf.mxu1  ;;  %v2059_v17 = vpop.f32.mrf.mxu0 }
 0x649   :  { %v2063_v19 = vadd.f32 %v2059_v17, %v1992_v18  ;;  %v1991_v62 = vadd.f32 %v1987_v16, %v1920_v60 }
 0x64a   :  { %v3219_v20 = vpop.f32.mrf.mxu1  ;;  %v3230_v21 = vpop.f32.mrf.mxu0 }
 0x64b   :  { %v2782_v61 = vmul.f32 -1.442695, %v2063_v19 }
 0x64d   :  { %3414 = vpow2.f32 %v2782_v61 }
 0x64e   :  { %3416 = vtanh.f32 %v1991_v62 }
 0x651   :  { %v3411_v63 = vpop.eup %3410 }
 0x652   :  { %v3413_v1 = vpop.eup %3412  ;;  %v2067_v2 = vadd.f32 1.0, %v3411_v63 }
 0x653   :  { %v2073_v3 = vadd.f32 1.0, %v3413_v1 }
 0x654   :  { %3418 = vrcp.f32 %v2067_v2  ;;  %v2405_v2 = vld [vmem:[#allocation4 + $0x7] sm:$0x1] }
 0x655   :  { %3420 = vrcp.f32 %v2073_v3 }
 0x65a   :  { %v3415_v6 = vpop.eup %3414 }
 0x65b   :  { %v3417_v14 = vpop.eup %3416  ;;  %v2083_v25 = vadd.f32 1.0, %v3415_v6  ;;  %v2480_v6 = vld [vmem:[#allocation4 + $0xf] sm:$0x1] }
 0x65d   :  { %3422 = vrcp.f32 %v2083_v25 }
 0x661   :  { %v3419_v22 = vpop.eup %3418 }
 0x662   :  { %v3421_v23 = vpop.eup %3420  ;;  %v2078_v24 = vmul.f32 %v3419_v22, %v3417_v14 }
 0x663   :  { %v2076_v26 = vmul.f32 %v3421_v23, %v3928_v56 }
 0x665   :  { %v3977_v27 = vadd.f32 %v2078_v24, %v2076_v26 }
 0x667   :  { %3424 = vtanh.f32 %v3977_v27 }
 0x66a   :  { %v3423_v28 = vpop.eup %3422 }
 0x674   :  { %v3425_v29 = vpop.eup %3424 }
 0x675   :  { %v2087_v30 = vmul.f32 %v3425_v29, %v3423_v28 }
 0x677   :  { %3240 = vmatmul.mubr.msk.f32.vlgmr.msra.gmra.mxu1 %vm156_vm3, %v2087_v30  ;;  %2088 = vst.msk [vmem:[#allocation11 + $0x5] sm:$0x1] %vm68_vm1, %v2087_v30  ;;  %3251 = vmatmul.mubr.msk.f32.vlgmr.msra.gmra.mxu0 %vm156_vm3, %v2087_v30 }
 0x678   :  { %3254 = vmatpush3.msra.mxu1 %v3983_v31  ;;  %3265 = vmatpush3.msra.mxu0 %v3986_v32 }
 0x679   :  { %3255 = vmatprep.subr.mxu1 %v3565_v0  ;;  %3266 = vmatprep.subr.mxu0 %v3565_v0 }
 0x67a   :  { %3256 = vmatpush3.msra.mxu1 %v3991_v33  ;;  %3267 = vmatpush3.msra.mxu0 %v3994_v34 }
 0x67b   :  { %3257 = vmatprep.subr.mxu1 %v3565_v0  ;;  %3268 = vmatprep.subr.mxu0 %v3565_v0 }
 0x67c   :  { %3258 = vmatpush3.msra.mxu1 %v3999_v35  ;;  %3269 = vmatpush3.msra.mxu0 %v4002_v36 }
 0x67d   :  { %3259 = vmatprep.subr.mxu1 %v3565_v0  ;;  %3270 = vmatprep.subr.mxu0 %v3565_v0 }
 0x67e   :  { %3260 = vmatpush3.msra.mxu1 %v4007_v37  ;;  %3261 = vmatprep.mubr.msk.f32.mxu1 %vm3566_vm0, %v3565_v0 }
 0x67f   :  { %3271 = vmatpush3.msra.mxu0 %v4012_v38  ;;  %3272 = vmatprep.mubr.msk.f32.mxu0 %vm3566_vm0, %v3565_v0 }
 0x680   :  { %3262 = vmatmul.mubr.msk.f32.vlgmr.msra.gmra.mxu1 %vm156_vm3, %v2087_v30  ;;  %3273 = vmatmul.mubr.msk.f32.vlgmr.msra.gmra.mxu0 %vm156_vm3, %v2087_v30  ;;  %v2624_v30 = vld [vmem:[#allocation4 + $0x1f] sm:$0x1] }
 0x681   :  { %3275 = vmatprep.subr.mxu1 %v3565_v0  ;;  %3286 = vmatprep.subr.mxu0 %v3565_v0 }
 0x682   :  { %3276 = vmatpush3.msra.mxu1 %v3466_v39  ;;  %3287 = vmatpush3.msra.mxu0 %v3467_v40 }
 0x683   :  { %3277 = vmatprep.subr.mxu1 %v3565_v0  ;;  %3288 = vmatprep.subr.mxu0 %v3565_v0 }
 0x684   :  { %3278 = vmatpush3.msra.mxu1 %v3468_v41  ;;  %3289 = vmatpush3.msra.mxu0 %v3469_v42 }
 0x685   :  { %3279 = vmatprep.subr.mxu1 %v3565_v0  ;;  %3290 = vmatprep.subr.mxu0 %v3565_v0 }
 0x686   :  { %3280 = vmatpush3.msra.mxu1 %v3470_v43  ;;  %3291 = vmatpush3.msra.mxu0 %v3471_v44 }
 0x687   :  { %3281 = vmatprep.subr.mxu1 %v3565_v0  ;;  %3292 = vmatprep.subr.mxu0 %v3565_v0 }
 0x688   :  { %3282 = vmatpush3.msra.mxu1 %v3472_v45  ;;  %3293 = vmatpush3.msra.mxu0 %v3473_v46 }
 0x689   :  { %3283 = vmatprep.mubr.msk.f32.mxu1 %vm3566_vm0, %v3565_v0  ;;  %3294 = vmatprep.mubr.msk.f32.mxu0 %vm3566_vm0, %v3565_v0 }
 0x68a   :  { %3297 = vmatprep.subr.mxu1 %v3565_v0  ;;  %3308 = vmatprep.subr.mxu0 %v3565_v0 }
 0x737   :  { %v2159_v48 = vpop.f32.mrf.mxu1  ;;  %v2231_v50 = vpop.f32.mrf.mxu0 }
 0x738   :  { %v2163_v51 = vadd.f32 %v2159_v48, %v2089_v47  ;;  %v2235_v52 = vadd.f32 %v2231_v50, %v2164_v49 }
 0x739   :  { %v3241_v53 = vpop.f32.mrf.mxu1  ;;  %v3252_v54 = vpop.f32.mrf.mxu0 }
 0x73a   :  { %v2787_v55 = vmul.f32 -1.442695, %v2163_v51  ;;  %v2788_v56 = vmul.f32 -1.442695, %v2235_v52 }
 0x73c   :  { %3426 = vpow2.f32 %v2787_v55 }
 0x73d   :  { %3428 = vpow2.f32 %v2788_v56 }
 0x740   :  { %v2303_v57 = vpop.f32.mrf.mxu1  ;;  %v2375_v58 = vpop.f32.mrf.mxu0 }
 0x741   :  { %v2379_v4 = vadd.f32 %v2375_v58, %v2308_v59  ;;  %v2307_v11 = vadd.f32 %v2303_v57, %v2236_v8 }
 0x742   :  { %v3263_v5 = vpop.f32.mrf.mxu1  ;;  %v3274_v7 = vpop.f32.mrf.mxu0 }
 0x743   :  { %v2789_v10 = vmul.f32 -1.442695, %v2379_v4 }
 0x745   :  { %3430 = vpow2.f32 %v2789_v10 }
 0x746   :  { %3432 = vtanh.f32 %v2307_v11 }
 0x749   :  { %v3427_v13 = vpop.eup %3426 }
 0x74a   :  { %v3429_v9 = vpop.eup %3428  ;;  %v2383_v15 = vadd.f32 1.0, %v3427_v13 }
 0x74b   :  { %v2389_v12 = vadd.f32 1.0, %v3429_v9 }
 0x74c   :  { %3434 = vrcp.f32 %v2383_v15 }
 0x74d   :  { %3436 = vrcp.f32 %v2389_v12 }
 0x752   :  { %v3431_v16 = vpop.eup %3430 }
 0x753   :  { %v3433_v17 = vpop.eup %3432  ;;  %v2399_v21 = vadd.f32 1.0, %v3431_v16 }
 0x755   :  { %3438 = vrcp.f32 %v2399_v21 }
 0x759   :  { %v3435_v18 = vpop.eup %3434 }
 0x75a   :  { %v3437_v19 = vpop.eup %3436  ;;  %v2394_v20 = vmul.f32 %v3435_v18, %v3433_v17 }
 0x75b   :  { %v2392_v60 = vmul.f32 %v3437_v19, %v3977_v27 }
 0x75d   :  { %v2395_v61 = vadd.f32 %v2394_v20, %v2392_v60 }
 0x75f   :  { %3440 = vtanh.f32 %v2395_v61 }
 0x762   :  { %v3439_v62 = vpop.eup %3438 }
 0x76c   :  { %v3441_v63 = vpop.eup %3440 }
 0x76d   :  { %v2403_v1 = vmul.f32 %v3441_v63, %v3439_v62 }
 0x76f   :  { %3284 = vmatmul.mubr.msk.f32.vlgmr.msra.gmra.mxu1 %vm156_vm3, %v2403_v1  ;;  %2404 = vst.msk [vmem:[#allocation11 + $0x6] sm:$0x1] %vm68_vm1, %v2403_v1  ;;  %3295 = vmatmul.mubr.msk.f32.vlgmr.msra.gmra.mxu0 %vm156_vm3, %v2403_v1 }
 0x770   :  { %3298 = vmatpush3.msra.mxu1 %v3983_v31  ;;  %3309 = vmatpush3.msra.mxu0 %v3986_v32 }
 0x771   :  { %3299 = vmatprep.subr.mxu1 %v3565_v0  ;;  %3310 = vmatprep.subr.mxu0 %v3565_v0 }
 0x772   :  { %3300 = vmatpush3.msra.mxu1 %v3991_v33  ;;  %3311 = vmatpush3.msra.mxu0 %v3994_v34  ;;  %v2552_v33 = vld [vmem:[#allocation4 + $0x17] sm:$0x1] }
 0x773   :  { %3301 = vmatprep.subr.mxu1 %v3565_v0  ;;  %3312 = vmatprep.subr.mxu0 %v3565_v0 }
 0x774   :  { %3302 = vmatpush3.msra.mxu1 %v3999_v35  ;;  %3313 = vmatpush3.msra.mxu0 %v4002_v36 }
 0x775   :  { %3303 = vmatprep.subr.mxu1 %v3565_v0  ;;  %3314 = vmatprep.subr.mxu0 %v3565_v0 }
 0x776   :  { %3304 = vmatpush3.msra.mxu1 %v4007_v37  ;;  %3305 = vmatprep.mubr.msk.f32.mxu1 %vm3566_vm0, %v3565_v0 }
 0x777   :  { %3315 = vmatpush3.msra.mxu0 %v4012_v38  ;;  %3316 = vmatprep.mubr.msk.f32.mxu0 %vm3566_vm0, %v3565_v0 }
 0x778   :  { %3306 = vmatmul.mubr.msk.f32.vlgmr.msra.gmra.mxu1 %vm156_vm3, %v2403_v1  ;;  %3317 = vmatmul.mubr.msk.f32.vlgmr.msra.gmra.mxu0 %vm156_vm3, %v2403_v1 }
 0x82f   :  { %v2475_v3 = vpop.f32.mrf.mxu1  ;;  %v2547_v14 = vpop.f32.mrf.mxu0 }
 0x830   :  { %v2479_v22 = vadd.f32 %v2475_v3, %v2405_v2  ;;  %v2551_v23 = vadd.f32 %v2547_v14, %v2480_v6 }
 0x831   :  { %v3285_v24 = vpop.f32.mrf.mxu1  ;;  %v3296_v25 = vpop.f32.mrf.mxu0 }
 0x832   :  { %v2794_v26 = vmul.f32 -1.442695, %v2479_v22  ;;  %v2795_v27 = vmul.f32 -1.442695, %v2551_v23 }
 0x834   :  { %3442 = vpow2.f32 %v2794_v26 }
 0x835   :  { %3444 = vpow2.f32 %v2795_v27 }
 0x838   :  { %v2619_v28 = vpop.f32.mrf.mxu1  ;;  %v2691_v29 = vpop.f32.mrf.mxu0 }
 0x839   :  { %v2695_v0 = vadd.f32 %v2691_v29, %v2624_v30  ;;  %v2623_v35 = vadd.f32 %v2619_v28, %v2552_v33 }
 0x83a   :  { %v3307_v31 = vpop.f32.mrf.mxu1  ;;  %v3318_v32 = vpop.f32.mrf.mxu0 }
 0x83b   :  { %v2796_v34 = vmul.f32 -1.442695, %v2695_v0 }
 0x83d   :  { %3446 = vpow2.f32 %v2796_v34 }
 0x83e   :  { %3448 = vtanh.f32 %v2623_v35 }
 0x841   :  { %v3443_v36 = vpop.eup %3442 }
 0x842   :  { %v3445_v37 = vpop.eup %3444  ;;  %v2699_v38 = vadd.f32 1.0, %v3443_v36 }
 0x843   :  { %v2705_v39 = vadd.f32 1.0, %v3445_v37 }
 0x844   :  { %3450 = vrcp.f32 %v2699_v38 }
 0x845   :  { %3452 = vrcp.f32 %v2705_v39 }
 0x84a   :  { %v3447_v40 = vpop.eup %3446 }
 0x84b   :  { %v3449_v41 = vpop.eup %3448  ;;  %v2715_v45 = vadd.f32 1.0, %v3447_v40 }
 0x84d   :  { %3454 = vrcp.f32 %v2715_v45 }
 0x851   :  { %v3451_v42 = vpop.eup %3450 }
 0x852   :  { %v3453_v43 = vpop.eup %3452  ;;  %v2710_v44 = vmul.f32 %v3451_v42, %v3449_v41 }
 0x853   :  { %v2708_v46 = vmul.f32 %v3453_v43, %v2395_v61 }
 0x855   :  { %v2711_v47 = vadd.f32 %v2710_v44, %v2708_v46 }
 0x857   :  { %3456 = vtanh.f32 %v2711_v47  ;;  %2722 = vst.msk [vmem:[#allocation3] sm:$0x1] %vm68_vm1, %v2711_v47 }
 0x85a   :  { %v3455_v48 = vpop.eup %3454 }
 0x864   :  { %v3457_v49 = vpop.eup %3456 }
 0x865   :  { %v2719_v50 = vmul.f32 %v3457_v49, %v3455_v48 }
 0x867   :  { %2720 = vst.msk [vmem:[#allocation11 + $0x7] sm:$0x1] %vm68_vm1, %v2719_v50  ;;  %2721 = vst.msk [vmem:[#allocation2] sm:$0x1] %vm68_vm1, %v2719_v50 }
 0x868   :  { %3545 = shalt.err (!%p3542_p5)
}
 0x869   :  { %2732 = dma.vmem_to_hbm [thread:$0]  %s2730_s5, 128, %s4069_s6, [#allocation7]  }
 0x86a   :  { %3558 = dma.done.wait [#allocation7], 128  }
 0x86b   :  { %3559 = vsyncadd [#allocation7], 4294967168 }
 0x86c   :  { %2736 = vsyncpa [#allocation6], 1 }
 0x86d   :  { %2737 = vsyncpa [#allocation9], 1 }
 0x86e   :  { %2738 = vsyncpa [#allocation7], 1 }

</bundles_post_ra>
